<compile_context>
chip_gen: v6e
topology: v6e:2x2x1
jax: 0.10.0
libtpu: 0.0.40
codegen_flags: <defaults>
</compile_context>

<pallas_src>
import math
import functools

import jax
import jax.numpy as jnp
from jax.experimental import pallas as pl
from jax.experimental.pallas import tpu as pltpu

LOG2PI = 0.5 * math.log(2.0 * math.pi)   # as in degmo utils


def _round_up(x, m):
    return ((x + m - 1) // m) * m


# --------------------------------------------------------------------------
# Fused kernel: encoder linear -> nearest-embed -> decoder linear -> losses
# All weights resident in VMEM (constant index maps); one row-tile per step.
# --------------------------------------------------------------------------
def _vqvae_fused_kernel(x_ref, we_ref, be_ref, emb_ref, e2_ref, wd_ref, bd_ref,
                        idx_ref, rec_ref, vq_ref, *, n_valid, c_cols, tile):
    pid = pl.program_id(0)
    x = x_ref[...]                                             # (T, P) padded patches
    p = x.shape[1]

    # ---- encoder: per-patch linear (stride-4 4x4 conv) ----
    z_e = jnp.dot(x, we_ref[...], preferred_element_type=jnp.float32) + be_ref[...]

    # ---- nearest-embed VQ (codebook norms e2 precomputed in wrapper) ----
    e = emb_ref[...]                                           # (D, K)
    z2 = jnp.sum(z_e * z_e, axis=1, keepdims=True)             # (T, 1)
    ze = jnp.dot(z_e, e, preferred_element_type=jnp.float32)   # (T, K)
    dist = z2 - 2.0 * ze + e2_ref[...]                         # padded K cols are huge
    kcol = jax.lax.broadcasted_iota(jnp.int32, dist.shape, 1)
    dmin = jnp.min(dist, axis=1, keepdims=True)
    # first index attaining the minimum (matches torch.argmin tie-break)
    idx_col = jnp.min(jnp.where(dist == dmin, kcol, dist.shape[1]),
                      axis=1, keepdims=True)                   # (T, 1)
    onehot = (kcol == idx_col).astype(jnp.float32)             # (T, K)
    z_q = jax.lax.dot_general(onehot, e, (((1,), (1,)), ((), ())),
                              preferred_element_type=jnp.float32)  # (T, D)

    # ---- decoder: per-patch linear, gauss head split as [mu | logs] halves ----
    dec = jnp.dot(z_q, wd_ref[...], preferred_element_type=jnp.float32) + bd_ref[...]
    mu = dec[:, :p]                                            # aligned with x layout
    logs = jnp.tanh(dec[:, p:])

    # ---- padding masks (row padding to tile multiple, lane padding to 128) ----
    row = pid * tile + jax.lax.broadcasted_iota(jnp.int32, (tile, 1), 0)
    row_m = (row < n_valid).astype(jnp.float32)                # (T, 1)
    col_m = (jax.lax.broadcasted_iota(jnp.int32, (tile, p), 1)
             < c_cols).astype(jnp.float32)                     # (T, P)

    # ---- fused loss partials: reduce over rows only -> lane-dense (1, ·) ----
    diff = x - mu
    rec_t = (0.5 * diff * diff * jnp.exp(-2.0 * logs) + LOG2PI + logs) * (row_m * col_m)
    rec_ref[...] = jnp.sum(rec_t, axis=0, keepdims=True)       # (1, P)

    q = (z_q - z_e) * row_m                                    # padded D cols are 0
    vq_ref[...] = jnp.sum(q * q, axis=0, keepdims=True)        # (1, D)

    # ---- lane-dense index output: idx_lane[0, t] = idx_col[t] ----
    # diag-select + sublane reduce uses only plain broadcast/where/sum ops.
    ri = jax.lax.broadcasted_iota(jnp.int32, (tile, tile), 0)
    ci = jax.lax.broadcasted_iota(jnp.int32, (tile, tile), 1)
    diag = jnp.where(ri == ci,
                     jnp.broadcast_to(idx_col.astype(jnp.float32), (tile, tile)),
                     0.0)
    idx_ref[...] = jnp.sum(diag, axis=0, keepdims=True).astype(jnp.int32)  # (1, T)


# --------------------------------------------------------------------------
# Parameters (logical, unpadded shapes; padding happens in the forward wrapper)
# --------------------------------------------------------------------------
def init_params(key, *, c, d, k):
    k1, k2, k3 = jax.random.split(key, 3)
    patch = c * 4 * 4
    out_patch = 2 * c * 4 * 4   # output_type == 'gauss' -> 2*c channels
    return {
        "w_enc": 0.05 * jax.random.normal(k1, (patch, d), jnp.float32),
        "b_enc": jnp.zeros((1, d), jnp.float32),
        "emb":   jax.random.normal(k2, (d, k), jnp.float32),   # NearestEmbed(k, d)
        "w_dec": 0.05 * jax.random.normal(k3, (d, out_patch), jnp.float32),
        "b_dec": jnp.zeros((1, out_patch), jnp.float32),
    }


# --------------------------------------------------------------------------
# Forward pass
# --------------------------------------------------------------------------
def vqvae_forward(x, params, *, beta=0.25, tile_rows=256):
    """x: (B, c, H, W) float32 NCHW (like PyTorch). Returns (loss, info, index)."""
    B, c, H, W = x.shape
    Hl, Wl = H // 4, W // 4
    n = B * Hl * Wl
    c16 = c * 16
    d = params["w_enc"].shape[1]
    k = params["emb"].shape[1]

    # static padded (lane-dense) dims
    p_pad = _round_up(c16, 128)        # encoder input / mu half / logs half width
    d_pad = _round_up(d, 128)
    k_pad = _round_up(k, 128)
    tile = max(128, min(_round_up(tile_rows, 128), _round_up(n, 128)))
    num_tiles = -(-n // tile)
    n_pad = num_tiles * tile

    # ---- im2col (one XLA transpose) + zero-pad rows/lanes ----
    # TODO(synk): exact FullConvEncoder architecture unavailable; single stride-4 conv used.
    patches = (x.reshape(B, c, Hl, 4, Wl, 4)
                 .transpose(0, 2, 4, 1, 3, 5)
                 .reshape(n, c16))
    x_pat = jnp.zeros((n_pad, p_pad), jnp.float32).at[:n, :c16].set(patches)

    # ---- pad parameters to lane width once (zero padding keeps math exact) ----
    w_enc = jnp.zeros((p_pad, d_pad), jnp.float32).at[:c16, :d].set(params["w_enc"])
    b_enc = jnp.zeros((1, d_pad), jnp.float32).at[:, :d].set(params["b_enc"])
    emb = jnp.zeros((d_pad, k_pad), jnp.float32).at[:d, :k].set(params["emb"])
    # hoisted codebook squared norms; padded codes get a huge norm -> never argmin
    e2 = jnp.sum(emb * emb, axis=0, keepdims=True)
    e2 = jnp.where(jnp.arange(k_pad)[None, :] < k, e2, 1e30)
    # decoder weights re-packed so output = [mu (p_pad) | logs (p_pad)]
    # TODO(synk): exact FullConvDecoder architecture unavailable; single stride-4 deconv used.
    w_dec = jnp.zeros((d_pad, 2 * p_pad), jnp.float32)
    w_dec = w_dec.at[:d, :c16].set(params["w_dec"][:, :c16])
    w_dec = w_dec.at[:d, p_pad:p_pad + c16].set(params["w_dec"][:, c16:])
    b_dec = jnp.zeros((1, 2 * p_pad), jnp.float32)
    b_dec = b_dec.at[:, :c16].set(params["b_dec"][:, :c16])
    b_dec = b_dec.at[:, p_pad:p_pad + c16].set(params["b_dec"][:, c16:])

    # ---- fused Pallas kernel ----
    idx_out, rec_out, vq_out = pl.pallas_call(
        functools.partial(_vqvae_fused_kernel, n_valid=n, c_cols=c16, tile=tile),
        out_shape=(
            jax.ShapeDtypeStruct((num_tiles, 1, tile), jnp.int32),
            jax.ShapeDtypeStruct((num_tiles, 1, p_pad), jnp.float32),
            jax.ShapeDtypeStruct((num_tiles, 1, d_pad), jnp.float32),
        ),
        grid=(num_tiles,),
        in_specs=[
            pl.BlockSpec((tile, p_pad), lambda i: (i, 0)),          # x patches
            pl.BlockSpec((p_pad, d_pad), lambda i: (0, 0)),         # w_enc (resident)
            pl.BlockSpec((1, d_pad), lambda i: (0, 0)),             # b_enc
            pl.BlockSpec((d_pad, k_pad), lambda i: (0, 0)),         # codebook
            pl.BlockSpec((1, k_pad), lambda i: (0, 0)),             # hoisted e2
            pl.BlockSpec((d_pad, 2 * p_pad), lambda i: (0, 0)),     # w_dec
            pl.BlockSpec((1, 2 * p_pad), lambda i: (0, 0)),         # b_dec
        ],
        out_specs=(
            pl.BlockSpec((None, 1, tile), lambda i: (i, 0, 0)),     # indices (lane-dense)
            pl.BlockSpec((None, 1, p_pad), lambda i: (i, 0, 0)),    # recon partials
            pl.BlockSpec((None, 1, d_pad), lambda i: (i, 0, 0)),    # vq partials
        ),
        compiler_params=pltpu.CompilerParams(
            dimension_semantics=("parallel",)),
    )(x_pat, w_enc, b_enc, emb, e2, w_dec, b_dec)

    # ---- tiny final reductions (per-tile partials -> scalars) ----
    recon = jnp.sum(rec_out) / B
    vqsq = jnp.sum(vq_out) / B
    vq_loss = vqsq            # forward value; detach() only affects gradients
    commit_loss = vqsq
    loss = recon + vq_loss + beta * commit_loss

    # TODO(synk): PixelCNN prior_loss omitted (prior network source unavailable).
    # TODO(synk): straight-through estimator (stop_gradient plumbing) not implemented;
    #             forward values only.
    info = {
        "reconstruction_loss": recon,
        "vq_loss": vq_loss,
        "commitment_loss": commit_loss,
    }
    index = idx_out.reshape(-1)[:n].reshape(B, Hl, Wl)
    return loss, info, index


if __name__ == "__main__":
    # small shapes consistent with the module defaults (c=3, d=64)
    B, c, H, W = 2, 3, 16, 16
    k, d = 128, 64
    key = jax.random.PRNGKey(0)
    kx, kp = jax.random.split(key)

    x = jax.random.normal(kx, (B, c, H, W), jnp.float32)
    params = init_params(kp, c=c, d=d, k=k)

    fwd = jax.jit(functools.partial(vqvae_forward, beta=0.25))
    loss, info, index = fwd(x, params)
    jax.block_until_ready(loss)
    jax.block_until_ready(index)

    assert index.shape == (B, H // 4, W // 4)
    assert bool(jnp.isfinite(loss))
    assert bool(jnp.all(index >= 0)) and bool(jnp.all(index < k))
    print("KERNEL_OK")
</pallas_src>

<mosaic_0001>
module attributes {stable_mosaic.version = 11 : i64} {
  func.func @_vqvae_fused_kernel(%arg0: i32, %arg1: memref<128x128xf32, #tpu.memory_space<vmem>>, %arg2: memref<128x128xf32, #tpu.memory_space<vmem>>, %arg3: memref<1x128xf32, #tpu.memory_space<vmem>>, %arg4: memref<128x128xf32, #tpu.memory_space<vmem>>, %arg5: memref<1x128xf32, #tpu.memory_space<vmem>>, %arg6: memref<128x256xf32, #tpu.memory_space<vmem>>, %arg7: memref<1x256xf32, #tpu.memory_space<vmem>>, %arg8: memref<1x1x128xi32, #tpu.memory_space<vmem>>, %arg9: memref<1x1x128xf32, #tpu.memory_space<vmem>>, %arg10: memref<1x1x128xf32, #tpu.memory_space<vmem>>) attributes {dimension_semantics = [#tpu.dimension_semantics<parallel>], iteration_bounds = array<i64: 1>, scalar_prefetch = 0 : i64, scratch_operands = 0 : i64, tpu.core_type = #tpu.core_type<tc>, window_params = [{transform_indices = @transform_0, window_bounds = array<i64: 128, 128>}, {pipeline_mode = #tpu.pipeline_mode<synchronous>, transform_indices = @transform_1, window_bounds = array<i64: 128, 128>}, {pipeline_mode = #tpu.pipeline_mode<synchronous>, transform_indices = @transform_2, window_bounds = array<i64: 1, 128>}, {pipeline_mode = #tpu.pipeline_mode<synchronous>, transform_indices = @transform_3, window_bounds = array<i64: 128, 128>}, {pipeline_mode = #tpu.pipeline_mode<synchronous>, transform_indices = @transform_4, window_bounds = array<i64: 1, 128>}, {pipeline_mode = #tpu.pipeline_mode<synchronous>, transform_indices = @transform_5, window_bounds = array<i64: 128, 256>}, {pipeline_mode = #tpu.pipeline_mode<synchronous>, transform_indices = @transform_6, window_bounds = array<i64: 1, 256>}, {transform_indices = @transform_7, window_bounds = array<i64: 1, 1, 128>}, {transform_indices = @transform_8, window_bounds = array<i64: 1, 1, 128>}, {transform_indices = @transform_9, window_bounds = array<i64: 1, 1, 128>}]} {
    %c0 = arith.constant 0 : index
    %c0_0 = arith.constant 0 : index
    %0 = vector.load %arg1[%c0, %c0_0] : memref<128x128xf32, #tpu.memory_space<vmem>>, vector<128x128xf32>
    %c0_1 = arith.constant 0 : index
    %c0_2 = arith.constant 0 : index
    %1 = vector.load %arg2[%c0_1, %c0_2] : memref<128x128xf32, #tpu.memory_space<vmem>>, vector<128x128xf32>
    %cst = arith.constant dense<0.000000e+00> : vector<128x128xf32>
    %2 = tpu.matmul %0, %1, %cst {dimension_numbers = #tpu.dot_dimension_numbers<[1], [0], [0], [1], [0, 0, 1, 1], [], []>} : vector<128x128xf32>, vector<128x128xf32>, vector<128x128xf32> -> vector<128x128xf32>
    %c0_3 = arith.constant 0 : index
    %c0_4 = arith.constant 0 : index
    %3 = vector.load %arg3[%c0_3, %c0_4] : memref<1x128xf32, #tpu.memory_space<vmem>>, vector<1x128xf32>
    %4 = vector.broadcast %3 : vector<1x128xf32> to vector<128x128xf32>
    %5 = arith.addf %2, %4 : vector<128x128xf32>
    %c0_5 = arith.constant 0 : index
    %c0_6 = arith.constant 0 : index
    %6 = vector.load %arg4[%c0_5, %c0_6] : memref<128x128xf32, #tpu.memory_space<vmem>>, vector<128x128xf32>
    %7 = arith.mulf %5, %5 : vector<128x128xf32>
    %cst_7 = arith.constant dense<0.000000e+00> : vector<128xf32>
    %8 = vector.multi_reduction <add>, %7, %cst_7 [1] : vector<128x128xf32> to vector<128xf32>
    %9 = vector.shape_cast %8 : vector<128xf32> to vector<128x1xf32>
    %cst_8 = arith.constant dense<0.000000e+00> : vector<128x128xf32>
    %10 = tpu.matmul %5, %6, %cst_8 {dimension_numbers = #tpu.dot_dimension_numbers<[1], [0], [0], [1], [0, 0, 1, 1], [], []>} : vector<128x128xf32>, vector<128x128xf32>, vector<128x128xf32> -> vector<128x128xf32>
    %cst_9 = arith.constant 2.000000e+00 : f32
    %11 = vector.broadcast %cst_9 : f32 to vector<128x128xf32>
    %12 = arith.mulf %11, %10 : vector<128x128xf32>
    %13 = vector.broadcast %9 : vector<128x1xf32> to vector<128x128xf32>
    %14 = arith.subf %13, %12 : vector<128x128xf32>
    %c0_10 = arith.constant 0 : index
    %c0_11 = arith.constant 0 : index
    %15 = vector.load %arg5[%c0_10, %c0_11] : memref<1x128xf32, #tpu.memory_space<vmem>>, vector<1x128xf32>
    %16 = vector.broadcast %15 : vector<1x128xf32> to vector<128x128xf32>
    %17 = arith.addf %14, %16 : vector<128x128xf32>
    %18 = tpu.iota {dimensions = array<i32: 1>} : vector<128x128xi32>
    %cst_12 = arith.constant dense<0x7F800000> : vector<128xf32>
    %19 = vector.multi_reduction <minimumf>, %17, %cst_12 [1] : vector<128x128xf32> to vector<128xf32>
    %20 = vector.shape_cast %19 : vector<128xf32> to vector<128x1xf32>
    %21 = vector.broadcast %20 : vector<128x1xf32> to vector<128x128xf32>
    %22 = arith.cmpf oeq, %17, %21 : vector<128x128xf32>
    %c128_i32 = arith.constant 128 : i32
    %23 = vector.broadcast %c128_i32 : i32 to vector<128x128xi32>
    %24 = arith.select %22, %18, %23 : vector<128x128xi1>, vector<128x128xi32>
    %cst_13 = arith.constant dense<2147483647> : vector<128xi32>
    %25 = vector.multi_reduction <minsi>, %24, %cst_13 [1] : vector<128x128xi32> to vector<128xi32>
    %26 = vector.shape_cast %25 : vector<128xi32> to vector<128x1xi32>
    %27 = vector.broadcast %26 : vector<128x1xi32> to vector<128x128xi32>
    %28 = arith.cmpi eq, %18, %27 : vector<128x128xi32>
    %29 = arith.extui %28 : vector<128x128xi1> to vector<128x128xi32>
    %30 = arith.sitofp %29 : vector<128x128xi32> to vector<128x128xf32>
    %cst_14 = arith.constant dense<0.000000e+00> : vector<128x128xf32>
    %31 = tpu.matmul %30, %6, %cst_14 {dimension_numbers = #tpu.dot_dimension_numbers<[1], [1], [0], [0], [0, 0, 1, 0], [], []>} : vector<128x128xf32>, vector<128x128xf32>, vector<128x128xf32> -> vector<128x128xf32>
    %c0_15 = arith.constant 0 : index
    %c0_16 = arith.constant 0 : index
    %32 = vector.load %arg6[%c0_15, %c0_16] : memref<128x256xf32, #tpu.memory_space<vmem>>, vector<128x256xf32>
    %cst_17 = arith.constant dense<0.000000e+00> : vector<128x256xf32>
    %33 = tpu.matmul %31, %32, %cst_17 {dimension_numbers = #tpu.dot_dimension_numbers<[1], [0], [0], [1], [0, 0, 1, 1], [], []>} : vector<128x128xf32>, vector<128x256xf32>, vector<128x256xf32> -> vector<128x256xf32>
    %c0_18 = arith.constant 0 : index
    %c0_19 = arith.constant 0 : index
    %34 = vector.load %arg7[%c0_18, %c0_19] : memref<1x256xf32, #tpu.memory_space<vmem>>, vector<1x256xf32>
    %35 = vector.broadcast %34 : vector<1x256xf32> to vector<128x256xf32>
    %36 = arith.addf %33, %35 : vector<128x256xf32>
    %37 = vector.extract_strided_slice %36 {offsets = [0, 0], sizes = [128, 128], strides = [1, 1]} : vector<128x256xf32> to vector<128x128xf32>
    %38 = vector.extract_strided_slice %36 {offsets = [0, 128], sizes = [128, 128], strides = [1, 1]} : vector<128x256xf32> to vector<128x128xf32>
    %39 = math.tanh %38 : vector<128x128xf32>
    %c128_i32_20 = arith.constant 128 : i32
    %40 = arith.muli %arg0, %c128_i32_20 : i32
    %41 = tpu.iota {dimensions = array<i32: 0>} : vector<128x1xi32>
    %42 = vector.broadcast %40 : i32 to vector<128x1xi32>
    %43 = arith.addi %42, %41 : vector<128x1xi32>
    %c32_i32 = arith.constant 32 : i32
    %44 = vector.broadcast %c32_i32 : i32 to vector<128x1xi32>
    %45 = arith.cmpi slt, %43, %44 : vector<128x1xi32>
    %46 = arith.extui %45 : vector<128x1xi1> to vector<128x1xi32>
    %47 = arith.sitofp %46 : vector<128x1xi32> to vector<128x1xf32>
    %48 = tpu.iota {dimensions = array<i32: 1>} : vector<128x128xi32>
    %c48_i32 = arith.constant 48 : i32
    %49 = vector.broadcast %c48_i32 : i32 to vector<128x128xi32>
    %50 = arith.cmpi slt, %48, %49 : vector<128x128xi32>
    %51 = arith.extui %50 : vector<128x128xi1> to vector<128x128xi32>
    %52 = arith.sitofp %51 : vector<128x128xi32> to vector<128x128xf32>
    %53 = arith.subf %0, %37 : vector<128x128xf32>
    %cst_21 = arith.constant 5.000000e-01 : f32
    %54 = vector.broadcast %cst_21 : f32 to vector<128x128xf32>
    %55 = arith.mulf %54, %53 : vector<128x128xf32>
    %56 = arith.mulf %55, %53 : vector<128x128xf32>
    %cst_22 = arith.constant -2.000000e+00 : f32
    %57 = vector.broadcast %cst_22 : f32 to vector<128x128xf32>
    %58 = arith.mulf %57, %39 : vector<128x128xf32>
    %59 = math.exp %58 : vector<128x128xf32>
    %60 = arith.mulf %56, %59 : vector<128x128xf32>
    %cst_23 = arith.constant 0.918938517 : f32
    %61 = vector.broadcast %cst_23 : f32 to vector<128x128xf32>
    %62 = arith.addf %60, %61 : vector<128x128xf32>
    %63 = arith.addf %62, %39 : vector<128x128xf32>
    %64 = vector.broadcast %47 : vector<128x1xf32> to vector<128x128xf32>
    %65 = arith.mulf %64, %52 : vector<128x128xf32>
    %66 = arith.mulf %63, %65 : vector<128x128xf32>
    %cst_24 = arith.constant dense<0.000000e+00> : vector<128xf32>
    %67 = vector.multi_reduction <add>, %66, %cst_24 [0] : vector<128x128xf32> to vector<128xf32>
    %68 = vector.shape_cast %67 : vector<128xf32> to vector<1x128xf32>
    %c0_25 = arith.constant 0 : index
    %c0_26 = arith.constant 0 : index
    %c0_27 = arith.constant 0 : index
    %69 = vector.load %arg9[%c0_25, %c0_26, %c0_27] : memref<1x1x128xf32, #tpu.memory_space<vmem>>, vector<1x1x128xf32>
    %70 = vector.shape_cast %69 : vector<1x1x128xf32> to vector<1x128xf32>
    %71 = vector.shape_cast %68 : vector<1x128xf32> to vector<1x1x128xf32>
    tpu.vector_store %arg9[%c0_25, %c0_26, %c0_27], %71 {strides = array<i32>} : memref<1x1x128xf32, #tpu.memory_space<vmem>>, vector<1x1x128xf32>,
    %72 = arith.subf %31, %5 : vector<128x128xf32>
    %73 = vector.broadcast %47 : vector<128x1xf32> to vector<128x128xf32>
    %74 = arith.mulf %72, %73 : vector<128x128xf32>
    %75 = arith.mulf %74, %74 : vector<128x128xf32>
    %cst_28 = arith.constant dense<0.000000e+00> : vector<128xf32>
    %76 = vector.multi_reduction <add>, %75, %cst_28 [0] : vector<128x128xf32> to vector<128xf32>
    %77 = vector.shape_cast %76 : vector<128xf32> to vector<1x128xf32>
    %c0_29 = arith.constant 0 : index
    %c0_30 = arith.constant 0 : index
    %c0_31 = arith.constant 0 : index
    %78 = vector.load %arg10[%c0_29, %c0_30, %c0_31] : memref<1x1x128xf32, #tpu.memory_space<vmem>>, vector<1x1x128xf32>
    %79 = vector.shape_cast %78 : vector<1x1x128xf32> to vector<1x128xf32>
    %80 = vector.shape_cast %77 : vector<1x128xf32> to vector<1x1x128xf32>
    tpu.vector_store %arg10[%c0_29, %c0_30, %c0_31], %80 {strides = array<i32>} : memref<1x1x128xf32, #tpu.memory_space<vmem>>, vector<1x1x128xf32>,
    %81 = tpu.iota {dimensions = array<i32: 0>} : vector<128x128xi32>
    %82 = tpu.iota {dimensions = array<i32: 1>} : vector<128x128xi32>
    %83 = arith.cmpi eq, %81, %82 : vector<128x128xi32>
    %84 = arith.sitofp %26 : vector<128x1xi32> to vector<128x1xf32>
    %85 = vector.shape_cast %84 : vector<128x1xf32> to vector<128x1xf32>
    %86 = vector.broadcast %85 : vector<128x1xf32> to vector<128x128xf32>
    %cst_32 = arith.constant 0.000000e+00 : f32
    %87 = vector.broadcast %cst_32 : f32 to vector<128x128xf32>
    %88 = arith.select %83, %86, %87 : vector<128x128xi1>, vector<128x128xf32>
    %cst_33 = arith.constant dense<0.000000e+00> : vector<128xf32>
    %89 = vector.multi_reduction <add>, %88, %cst_33 [0] : vector<128x128xf32> to vector<128xf32>
    %90 = vector.shape_cast %89 : vector<128xf32> to vector<1x128xf32>
    %91 = arith.fptosi %90 : vector<1x128xf32> to vector<1x128xi32>
    %c0_34 = arith.constant 0 : index
    %c0_35 = arith.constant 0 : index
    %c0_36 = arith.constant 0 : index
    %92 = vector.load %arg8[%c0_34, %c0_35, %c0_36] : memref<1x1x128xi32, #tpu.memory_space<vmem>>, vector<1x1x128xi32>
    %93 = vector.shape_cast %92 : vector<1x1x128xi32> to vector<1x128xi32>
    %94 = vector.shape_cast %91 : vector<1x128xi32> to vector<1x1x128xi32>
    tpu.vector_store %arg8[%c0_34, %c0_35, %c0_36], %94 {strides = array<i32>} : memref<1x1x128xi32, #tpu.memory_space<vmem>>, vector<1x1x128xi32>,
    return
  }
  func.func @transform_0(%arg0: i32) -> (i32, i32) {
    %c0_i32 = arith.constant 0 : i32
    %c0_i32_0 = arith.constant 0 : i32
    return %arg0, %c0_i32 : i32, i32
  }
  func.func @transform_1(%arg0: i32) -> (i32, i32) {
    %c0_i32 = arith.constant 0 : i32
    %c0_i32_0 = arith.constant 0 : i32
    %c0_i32_1 = arith.constant 0 : i32
    return %c0_i32, %c0_i32_0 : i32, i32
  }
  func.func @transform_2(%arg0: i32) -> (i32, i32) {
    %c0_i32 = arith.constant 0 : i32
    %c0_i32_0 = arith.constant 0 : i32
    %c0_i32_1 = arith.constant 0 : i32
    return %c0_i32, %c0_i32_0 : i32, i32
  }
  func.func @transform_3(%arg0: i32) -> (i32, i32) {
    %c0_i32 = arith.constant 0 : i32
    %c0_i32_0 = arith.constant 0 : i32
    %c0_i32_1 = arith.constant 0 : i32
    return %c0_i32, %c0_i32_0 : i32, i32
  }
  func.func @transform_4(%arg0: i32) -> (i32, i32) {
    %c0_i32 = arith.constant 0 : i32
    %c0_i32_0 = arith.constant 0 : i32
    %c0_i32_1 = arith.constant 0 : i32
    return %c0_i32, %c0_i32_0 : i32, i32
  }
  func.func @transform_5(%arg0: i32) -> (i32, i32) {
    %c0_i32 = arith.constant 0 : i32
    %c0_i32_0 = arith.constant 0 : i32
    %c0_i32_1 = arith.constant 0 : i32
    return %c0_i32, %c0_i32_0 : i32, i32
  }
  func.func @transform_6(%arg0: i32) -> (i32, i32) {
    %c0_i32 = arith.constant 0 : i32
    %c0_i32_0 = arith.constant 0 : i32
    %c0_i32_1 = arith.constant 0 : i32
    return %c0_i32, %c0_i32_0 : i32, i32
  }
  func.func @transform_7(%arg0: i32) -> (i32, i32, i32) {
    %c0_i32 = arith.constant 0 : i32
    %c0_i32_0 = arith.constant 0 : i32
    %c0_i32_1 = arith.constant 0 : i32
    return %arg0, %c0_i32, %c0_i32_0 : i32, i32, i32
  }
  func.func @transform_8(%arg0: i32) -> (i32, i32, i32) {
    %c0_i32 = arith.constant 0 : i32
    %c0_i32_0 = arith.constant 0 : i32
    %c0_i32_1 = arith.constant 0 : i32
    return %arg0, %c0_i32, %c0_i32_0 : i32, i32, i32
  }
  func.func @transform_9(%arg0: i32) -> (i32, i32, i32) {
    %c0_i32 = arith.constant 0 : i32
    %c0_i32_0 = arith.constant 0 : i32
    %c0_i32_1 = arith.constant 0 : i32
    return %arg0, %c0_i32, %c0_i32_0 : i32, i32, i32
  }
}

</mosaic_0001>

<bundles_post_ra>
// kernel: vqvae_forward.1
= control target key start
LH: loop header
LB: loop body
LE: loop exit
PB: predicated region body
PF: predicated region fallthrough
CT: control target
= control target key end

     0   :  { %s3140_s1 = inlined_call_operand.vmem [shape: f32[128,128], index: 1, kind: input, shape index: {}]   ;;  %s3141_s0 = inlined_call_operand.vmem [shape: f32[128,128], index: 0, kind: input, shape index: {}]   ;;  %s3142_s3 = inlined_call_operand.vmem [shape: f32[128,128], index: 3, kind: input, shape index: {}]   ;;  %s3143_s2 = inlined_call_operand.vmem [shape: f32[1,128], index: 2, kind: input, shape index: {}]   ;;  %s3144_s4 = inlined_call_operand.vmem [shape: f32[1,128], index: 4, kind: input, shape index: {}]   ;;  %s3145_s5 = inlined_call_operand.vmem [shape: f32[128,256], index: 5, kind: input, shape index: {}]   ;;  %s3146_s7 = inlined_call_operand.vmem [shape: s32[1,1,128], index: 7, kind: output, shape index: {0}]   ;;  %s3147_s9 = inlined_call_operand.vmem [shape: f32[1,1,128], index: 9, kind: output, shape index: {2}]   ;;  %s3148_s6 = inlined_call_operand.vmem [shape: f32[1,256], index: 6, kind: input, shape index: {}]   ;;  %s3149_s8 = inlined_call_operand.vmem [shape: f32[1,1,128], index: 8, kind: output, shape index: {1}]  }
   0x1   :  { %v60_v0 = vld [vmem:[%s3140_s1 + $0x78] sm:$0xff]  ;;  %v59_v1 = vld [vmem:[%s3140_s1 + $0x70] sm:$0xff]  ;;  %v58_v2 = vld [vmem:[%s3140_s1 + $0x68] sm:$0xff] }
   0x2   :  { %1749 = vmatprep.subr.mxu0 %v60_v0  ;;  %v57_v3 = vld [vmem:[%s3140_s1 + $0x60] sm:$0xff]  ;;  %v56_v5 = vld [vmem:[%s3140_s1 + $0x58] sm:$0xff]  ;;  %v55_v6 = vld [vmem:[%s3140_s1 + $0x50] sm:$0xff] }
   0x3   :  { %1750 = vmatpush3.msra.mxu0 %v60_v0  ;;  %v29_v4 = vld [vmem:[%s3141_s0] sm:$0xff]  ;;  %v54_v7 = vld [vmem:[%s3140_s1 + $0x48] sm:$0xff]  ;;  %v2080_v8 = vld [vmem:[%s3142_s3 + $0x78] sm:$0xff] }
   0x4   :  { %1751 = vmatprep.subr.mxu0 %v59_v1  ;;  %1781 = vmatprep.mubr.f32.mxu0 %v29_v4  ;;  %v2086_v9 = vld [vmem:[%s3142_s3 + $0x70] sm:$0xff]  ;;  %v53_v10 = vld [vmem:[%s3140_s1 + $0x40] sm:$0xff]  ;;  %v2095_v11 = vld [vmem:[%s3142_s3 + $0x68] sm:$0xff] }
   0x5   :  { %1752 = vmatpush3.msra.mxu0 %v59_v1  ;;  %1805 = vmatprep.subr.mxu1 %v2080_v8  ;;  %v52_v12 = vld [vmem:[%s3140_s1 + $0x38] sm:$0xff]  ;;  %v2105_v13 = vld [vmem:[%s3142_s3 + $0x60] sm:$0xff]  ;;  %v51_v14 = vld [vmem:[%s3140_s1 + $0x30] sm:$0xff] }
   0x6   :  { %1753 = vmatprep.subr.mxu0 %v58_v2  ;;  %1806 = vmatpush3.msra.mxu1 %v2080_v8  ;;  %v2115_v15 = vld [vmem:[%s3142_s3 + $0x58] sm:$0xff]  ;;  %v50_v16 = vld [vmem:[%s3140_s1 + $0x28] sm:$0xff]  ;;  %v2125_v17 = vld [vmem:[%s3142_s3 + $0x50] sm:$0xff] }
   0x7   :  { %1754 = vmatpush3.msra.mxu0 %v58_v2  ;;  %1807 = vmatprep.subr.mxu1 %v2086_v9  ;;  %v49_v18 = vld [vmem:[%s3140_s1 + $0x20] sm:$0xff]  ;;  %v2135_v19 = vld [vmem:[%s3142_s3 + $0x48] sm:$0xff]  ;;  %v48_v20 = vld [vmem:[%s3140_s1 + $0x18] sm:$0xff] }
   0x8   :  { %1755 = vmatprep.subr.mxu0 %v57_v3  ;;  %1808 = vmatpush3.msra.mxu1 %v2086_v9  ;;  %v2145_v21 = vld [vmem:[%s3142_s3 + $0x40] sm:$0xff]  ;;  %v47_v22 = vld [vmem:[%s3140_s1 + $0x10] sm:$0xff]  ;;  %v2155_v23 = vld [vmem:[%s3142_s3 + $0x38] sm:$0xff] }
   0x9   :  { %1756 = vmatpush3.msra.mxu0 %v57_v3  ;;  %1809 = vmatprep.subr.mxu1 %v2095_v11  ;;  %v46_v24 = vld [vmem:[%s3140_s1 + $0x8] sm:$0xff]  ;;  %v2165_v25 = vld [vmem:[%s3142_s3 + $0x30] sm:$0xff]  ;;  %v45_v26 = vld [vmem:[%s3140_s1] sm:$0xff] }
   0xa   :  { %1757 = vmatprep.subr.mxu0 %v56_v5  ;;  %1810 = vmatpush3.msra.mxu1 %v2095_v11  ;;  %v2175_v27 = vld [vmem:[%s3142_s3 + $0x28] sm:$0xff]  ;;  %v217_v29 = vld [vmem:[%s3142_s3 + $0x20] sm:$0xff]  ;;  %v31_v30 = vld [vmem:[%s3141_s0 + $0x10] sm:$0xff] }
   0xb   :  { %1758 = vmatpush3.msra.mxu0 %v56_v5  ;;  %1811 = vmatprep.subr.mxu1 %v2105_v13  ;;  %v30_v28 = vld [vmem:[%s3141_s0 + $0x8] sm:$0xff]  ;;  %v216_v31 = vld [vmem:[%s3142_s3 + $0x18] sm:$0xff]  ;;  %v33_v33 = vld [vmem:[%s3141_s0 + $0x20] sm:$0xff] }
   0xc   :  { %1759 = vmatprep.subr.mxu0 %v55_v6  ;;  %1812 = vmatpush3.msra.mxu1 %v2105_v13  ;;  %v32_v32 = vld [vmem:[%s3141_s0 + $0x18] sm:$0xff]  ;;  %v34_v34 = vld [vmem:[%s3141_s0 + $0x28] sm:$0xff]  ;;  %v35_v35 = vld [vmem:[%s3141_s0 + $0x30] sm:$0xff] }
   0xd   :  { %1760 = vmatpush3.msra.mxu0 %v55_v6  ;;  %1813 = vmatprep.subr.mxu1 %v2115_v15  ;;  %v36_v36 = vld [vmem:[%s3141_s0 + $0x38] sm:$0xff]  ;;  %v37_v37 = vld [vmem:[%s3141_s0 + $0x40] sm:$0xff]  ;;  %v38_v38 = vld [vmem:[%s3141_s0 + $0x48] sm:$0xff] }
   0xe   :  { %1761 = vmatprep.subr.mxu0 %v54_v7  ;;  %1814 = vmatpush3.msra.mxu1 %v2115_v15  ;;  %v39_v39 = vld [vmem:[%s3141_s0 + $0x50] sm:$0xff]  ;;  %v40_v40 = vld [vmem:[%s3141_s0 + $0x58] sm:$0xff]  ;;  %v41_v41 = vld [vmem:[%s3141_s0 + $0x60] sm:$0xff] }
   0xf   :  { %1762 = vmatpush3.msra.mxu0 %v54_v7  ;;  %1815 = vmatprep.subr.mxu1 %v2125_v17  ;;  %v42_v42 = vld [vmem:[%s3141_s0 + $0x68] sm:$0xff]  ;;  %v43_v43 = vld [vmem:[%s3141_s0 + $0x70] sm:$0xff]  ;;  %v44_v44 = vld [vmem:[%s3141_s0 + $0x78] sm:$0xff] }
  0x10   :  { %1763 = vmatprep.subr.mxu0 %v53_v10  ;;  %1816 = vmatpush3.msra.mxu1 %v2125_v17  ;;  %v215_v45 = vld [vmem:[%s3142_s3 + $0x10] sm:$0xff]  ;;  %v214_v46 = vld [vmem:[%s3142_s3 + $0x8] sm:$0xff]  ;;  %v213_v47 = vld [vmem:[%s3142_s3] sm:$0xff] }
  0x11   :  { %1764 = vmatpush3.msra.mxu0 %v53_v10  ;;  %1817 = vmatprep.subr.mxu1 %v2135_v19  ;;  %v2266_v49 = vld [vmem:[%s3143_s2] ss:$0 sm:$0xff] }
  0x12   :  { %1765 = vmatprep.subr.mxu0 %v52_v12  ;;  %1818 = vmatpush3.msra.mxu1 %v2135_v19 }
  0x13   :  { %1766 = vmatpush3.msra.mxu0 %v52_v12  ;;  %1819 = vmatprep.subr.mxu1 %v2145_v21 }
  0x14   :  { %1767 = vmatprep.subr.mxu0 %v51_v14  ;;  %1820 = vmatpush3.msra.mxu1 %v2145_v21 }
  0x15   :  { %1768 = vmatpush3.msra.mxu0 %v51_v14  ;;  %1821 = vmatprep.subr.mxu1 %v2155_v23 }
  0x16   :  { %1769 = vmatprep.subr.mxu0 %v50_v16  ;;  %1822 = vmatpush3.msra.mxu1 %v2155_v23 }
  0x17   :  { %1770 = vmatpush3.msra.mxu0 %v50_v16  ;;  %1823 = vmatprep.subr.mxu1 %v2165_v25 }
  0x18   :  { %1771 = vmatprep.subr.mxu0 %v49_v18  ;;  %1824 = vmatpush3.msra.mxu1 %v2165_v25 }
  0x19   :  { %1772 = vmatpush3.msra.mxu0 %v49_v18  ;;  %1825 = vmatprep.subr.mxu1 %v2175_v27 }
  0x1a   :  { %1773 = vmatprep.subr.mxu0 %v48_v20  ;;  %1826 = vmatpush3.msra.mxu1 %v2175_v27 }
  0x1b   :  { %1774 = vmatpush3.msra.mxu0 %v48_v20  ;;  %1827 = vmatprep.subr.mxu1 %v217_v29 }
  0x1c   :  { %1775 = vmatprep.subr.mxu0 %v47_v22  ;;  %1828 = vmatpush3.msra.mxu1 %v217_v29 }
  0x1d   :  { %1776 = vmatpush3.msra.mxu0 %v47_v22  ;;  %1829 = vmatprep.subr.mxu1 %v216_v31 }
  0x1e   :  { %1777 = vmatprep.subr.mxu0 %v46_v24  ;;  %1830 = vmatpush3.msra.mxu1 %v216_v31 }
  0x1f   :  { %1778 = vmatpush3.msra.mxu0 %v46_v24  ;;  %1831 = vmatprep.subr.mxu1 %v215_v45 }
  0x20   :  { %1779 = vmatprep.subr.mxu0 %v45_v26  ;;  %1832 = vmatpush3.msra.mxu1 %v215_v45 }
  0x21   :  { %1780 = vmatpush3.msra.mxu0 %v45_v26  ;;  %1833 = vmatprep.subr.mxu1 %v214_v46 }
  0x22   :  { %1782 = vmatmul.mubr.f32.vlgmr.msra.gmra.mxu0 %v30_v28  ;;  %1861 = vmatprep.subr.mxu0 %v2080_v8 }
  0x23   :  { %1784 = vmatprep.mubr.f32.mxu0 %v31_v30  ;;  %1862 = vmatpush3.xpose.msra.mxu0 %v2080_v8 }
  0x24   :  { %1863 = vmatprep.subr.mxu0 %v2086_v9  ;;  %1834 = vmatpush3.msra.mxu1 %v214_v46 }
  0x25   :  { %1835 = vmatprep.subr.mxu1 %v213_v47 }
  0x26   :  { %1785 = vmatmul.mubr.f32.gmra.mxu0 %v32_v32  ;;  %1836 = vmatpush3.msra.mxu1 %v213_v47 }
  0x27   :  { %1787 = vmatprep.mubr.f32.mxu0 %v33_v33  ;;  %1864 = vmatpush3.xpose.msra.mxu0 %v2086_v9 }
  0x28   :  { %1865 = vmatprep.subr.mxu0 %v2095_v11 }
  0x2a   :  { %1788 = vmatmul.mubr.f32.gmra.mxu0 %v34_v34 }
  0x2b   :  { %1790 = vmatprep.mubr.f32.mxu0 %v35_v35  ;;  %1866 = vmatpush3.xpose.msra.mxu0 %v2095_v11 }
  0x2c   :  { %1867 = vmatprep.subr.mxu0 %v2105_v13 }
  0x2e   :  { %1791 = vmatmul.mubr.f32.gmra.mxu0 %v36_v36 }
  0x2f   :  { %1793 = vmatprep.mubr.f32.mxu0 %v37_v37  ;;  %1868 = vmatpush3.xpose.msra.mxu0 %v2105_v13 }
  0x30   :  { %1869 = vmatprep.subr.mxu0 %v2115_v15 }
  0x32   :  { %1794 = vmatmul.mubr.f32.gmra.mxu0 %v38_v38 }
  0x33   :  { %1796 = vmatprep.mubr.f32.mxu0 %v39_v39  ;;  %1870 = vmatpush3.xpose.msra.mxu0 %v2115_v15  ;;  %v2367_v39 = vld [vmem:[%s3144_s4] ss:$0 sm:$0xff] }
  0x34   :  { %1871 = vmatprep.subr.mxu0 %v2125_v17 }
  0x36   :  { %1797 = vmatmul.mubr.f32.gmra.mxu0 %v40_v40 }
  0x37   :  { %1799 = vmatprep.mubr.f32.mxu0 %v41_v41  ;;  %1872 = vmatpush3.xpose.msra.mxu0 %v2125_v17 }
  0x38   :  { %1873 = vmatprep.subr.mxu0 %v2135_v19 }
  0x3a   :  { %1800 = vmatmul.mubr.f32.gmra.mxu0 %v42_v42 }
  0x3b   :  { %1802 = vmatprep.mubr.f32.mxu0 %v43_v43  ;;  %1874 = vmatpush3.xpose.msra.mxu0 %v2135_v19 }
  0x3c   :  { %1875 = vmatprep.subr.mxu0 %v2145_v21 }
  0x3e   :  { %1803 = vmatmul.mubr.f32.gmra.mxu0 %v44_v44 }
  0x3f   :  { %1876 = vmatpush3.xpose.msra.mxu0 %v2145_v21 }
  0x40   :  { %1877 = vmatprep.subr.mxu0 %v2155_v23 }
  0x43   :  { %1878 = vmatpush3.xpose.msra.mxu0 %v2155_v23 }
  0x44   :  { %1879 = vmatprep.subr.mxu0 %v2165_v25 }
  0x47   :  { %1880 = vmatpush3.xpose.msra.mxu0 %v2165_v25 }
  0x48   :  { %1881 = vmatprep.subr.mxu0 %v2175_v27 }
  0x4b   :  { %1882 = vmatpush3.xpose.msra.mxu0 %v2175_v27 }
  0x4c   :  { %1883 = vmatprep.subr.mxu0 %v217_v29 }
  0x4f   :  { %1884 = vmatpush3.xpose.msra.mxu0 %v217_v29 }
  0x50   :  { %1885 = vmatprep.subr.mxu0 %v216_v31 }
  0x53   :  { %1886 = vmatpush3.xpose.msra.mxu0 %v216_v31 }
  0x54   :  { %1887 = vmatprep.subr.mxu0 %v215_v45 }
  0x57   :  { %1888 = vmatpush3.xpose.msra.mxu0 %v215_v45 }
  0x58   :  { %1889 = vmatprep.subr.mxu0 %v214_v46 }
  0x5b   :  { %1890 = vmatpush3.xpose.msra.mxu0 %v214_v46 }
  0x5c   :  { %1891 = vmatprep.subr.mxu0 %v213_v47 }
  0x5f   :  { %1892 = vmatpush3.xpose.msra.mxu0 %v213_v47 }
  0xe2   :  { %v1783_v48 = vpop.f32.mrf.mxu0 }
  0xe3   :  { %v2272_v52 = vadd.f32 %v1783_v48, %v2266_v49 }
  0xe4   :  { %v134_v50 = vpop.f32.mrf.mxu0 }
  0xe5   :  { %v2269_v51 = vadd.f32 %v2266_v49, %v134_v50  ;;  %v230_v60 = vmul.f32 %v2272_v52, %v2272_v52 }
  0xe6   :  { %v1786_v53 = vpop.f32.mrf.mxu0 }
  0xe7   :  { %1837 = vmatprep.mubr.f32.mxu1 %v2269_v51  ;;  %v229_v54 = vmul.f32 %v2269_v51, %v2269_v51  ;;  %v2278_v55 = vadd.f32 %v1786_v53, %v2266_v49 }
  0xe8   :  { %v144_v56 = vpop.f32.mrf.mxu0  ;;  %1838 = vmatmul.mubr.f32.vlgmr.msra.gmra.mxu1 %v2272_v52 }
  0xe9   :  { %v2282_v57 = vadd.f32 %v2266_v49, %v144_v56  ;;  %245 = vadd.xlane.f32.xlu0 %v229_v54  ;;  %v232_v1 = vmul.f32 %v2278_v55, %v2278_v55 }
  0xea   :  { %v1789_v58 = vpop.f32.mrf.mxu0 }
  0xeb   :  { %1840 = vmatprep.mubr.f32.mxu1 %v2282_v57  ;;  %v231_v59 = vmul.f32 %v2282_v57, %v2282_v57  ;;  %v2290_v61 = vadd.f32 %v1789_v58, %v2266_v49 }
  0xec   :  { %v154_v62 = vpop.f32.mrf.mxu0  ;;  %1841 = vmatmul.mubr.f32.gmra.mxu1 %v2278_v55 }
  0xed   :  { %v2294_v63 = vadd.f32 %v2266_v49, %v154_v62  ;;  %249 = vadd.xlane.f32.xlu1 %v231_v59  ;;  %247 = vadd.xlane.f32.xlu0 %v230_v60  ;;  %v234_v6 = vmul.f32 %v2290_v61, %v2290_v61 }
  0xee   :  { %v1792_v0 = vpop.f32.mrf.mxu0 }
  0xef   :  { %1843 = vmatprep.mubr.f32.mxu1 %v2294_v63  ;;  %v233_v2 = vmul.f32 %v2294_v63, %v2294_v63  ;;  %v2302_v3 = vadd.f32 %v1792_v0, %v2266_v49 }
  0xf0   :  { %v164_v4 = vpop.f32.mrf.mxu0  ;;  %1844 = vmatmul.mubr.f32.gmra.mxu1 %v2290_v61 }
  0xf1   :  { %v2306_v5 = vadd.f32 %v2266_v49, %v164_v4  ;;  %251 = vadd.xlane.f32.xlu1 %v232_v1  ;;  %253 = vadd.xlane.f32.xlu0 %v233_v2  ;;  %v236_v12 = vmul.f32 %v2302_v3, %v2302_v3 }
  0xf2   :  { %v1795_v7 = vpop.f32.mrf.mxu0 }
  0xf3   :  { %1846 = vmatprep.mubr.f32.mxu1 %v2306_v5  ;;  %v235_v8 = vmul.f32 %v2306_v5, %v2306_v5  ;;  %v2314_v9 = vadd.f32 %v1795_v7, %v2266_v49 }
  0xf4   :  { %v174_v10 = vpop.f32.mrf.mxu0  ;;  %1847 = vmatmul.mubr.f32.gmra.mxu1 %v2302_v3 }
  0xf5   :  { %v2318_v11 = vadd.f32 %v2266_v49, %v174_v10  ;;  %255 = vadd.xlane.f32.xlu1 %v234_v6  ;;  %257 = vadd.xlane.f32.xlu0 %v235_v8  ;;  %v238_v18 = vmul.f32 %v2314_v9, %v2314_v9 }
  0xf6   :  { %v1798_v13 = vpop.f32.mrf.mxu0 }
  0xf7   :  { %1849 = vmatprep.mubr.f32.mxu1 %v2318_v11  ;;  %v237_v14 = vmul.f32 %v2318_v11, %v2318_v11  ;;  %v2326_v15 = vadd.f32 %v1798_v13, %v2266_v49 }
  0xf8   :  { %v184_v16 = vpop.f32.mrf.mxu0  ;;  %1850 = vmatmul.mubr.f32.gmra.mxu1 %v2314_v9 }
  0xf9   :  { %v2330_v17 = vadd.f32 %v2266_v49, %v184_v16  ;;  %259 = vadd.xlane.f32.xlu1 %v236_v12  ;;  %261 = vadd.xlane.f32.xlu0 %v237_v14  ;;  %v240_v24 = vmul.f32 %v2326_v15, %v2326_v15 }
  0xfa   :  { %v1801_v19 = vpop.f32.mrf.mxu0 }
  0xfb   :  { %1852 = vmatprep.mubr.f32.mxu1 %v2330_v17  ;;  %v239_v20 = vmul.f32 %v2330_v17, %v2330_v17  ;;  %v2338_v21 = vadd.f32 %v1801_v19, %v2266_v49 }
  0xfc   :  { %v194_v22 = vpop.f32.mrf.mxu0  ;;  %1853 = vmatmul.mubr.f32.gmra.mxu1 %v2326_v15 }
  0xfd   :  { %v2342_v23 = vadd.f32 %v2266_v49, %v194_v22  ;;  %263 = vadd.xlane.f32.xlu1 %v238_v18  ;;  %265 = vadd.xlane.f32.xlu0 %v239_v20  ;;  %v242_v30 = vmul.f32 %v2338_v21, %v2338_v21 }
  0xfe   :  { %v1804_v25 = vpop.f32.mrf.mxu0 }
  0xff   :  { %1855 = vmatprep.mubr.f32.mxu1 %v2342_v23  ;;  %v241_v26 = vmul.f32 %v2342_v23, %v2342_v23  ;;  %v2350_v27 = vadd.f32 %v1804_v25, %v2266_v49 }
 0x100   :  { %v204_v28 = vpop.f32.mrf.mxu0  ;;  %1856 = vmatmul.mubr.f32.gmra.mxu1 %v2338_v21 }
 0x101   :  { %v2354_v29 = vadd.f32 %v2266_v49, %v204_v28  ;;  %267 = vadd.xlane.f32.xlu1 %v240_v24  ;;  %269 = vadd.xlane.f32.xlu0 %v241_v26  ;;  %v244_v32 = vmul.f32 %v2350_v27, %v2350_v27 }
 0x103   :  { %1858 = vmatprep.mubr.f32.mxu1 %v2354_v29  ;;  %v243_v31 = vmul.f32 %v2354_v29, %v2354_v29 }
 0x104   :  { %1859 = vmatmul.mubr.f32.gmra.mxu1 %v2350_v27 }
 0x105   :  { %271 = vadd.xlane.f32.xlu1 %v242_v30  ;;  %273 = vadd.xlane.f32.xlu0 %v243_v31 }
 0x109   :  { %275 = vadd.xlane.f32.xlu1 %v244_v32 }
 0x172   :  { %v246_v33 = vpop.xlane.xlu0 %245 }
 0x176   :  { %v250_v34 = vpop.xlane.xlu1 %249  ;;  %v248_v37 = vpop.xlane.xlu0 %247 }
 0x17a   :  { %v252_v46 = vpop.xlane.xlu1 %251  ;;  %v254_v2 = vpop.xlane.xlu0 %253 }
 0x17e   :  { %v256_v59 = vpop.xlane.xlu1 %255  ;;  %v258_v18 = vpop.xlane.xlu0 %257 }
 0x182   :  { %v260_v10 = vpop.xlane.xlu1 %259  ;;  %v262_v32 = vpop.xlane.xlu0 %261 }
 0x186   :  { %v264_v25 = vpop.xlane.xlu1 %263 }
 0x1a8   :  { %v1839_v35 = vpop.f32.mrf.mxu1 }
 0x1a9   :  { %v423_v36 = vmul.f32 2.0, %v1839_v35 }
 0x1aa   :  { %v343_v38 = vpop.f32.mrf.mxu1 }
 0x1ab   :  { %v439_v40 = vsub.f32 %v248_v37, %v423_v36  ;;  %v422_v41 = vmul.f32 2.0, %v343_v38  ;;  %v268_v37 = vpop.xlane.xlu1 %267 }
 0x1ac   :  { %v1842_v42 = vpop.f32.mrf.mxu1 }
 0x1ad   :  { %v438_v43 = vsub.f32 %v246_v33, %v422_v41  ;;  %v425_v44 = vmul.f32 2.0, %v1842_v42  ;;  %v2370_v45 = vadd.f32 %v2367_v39, %v439_v40 }
 0x1ae   :  { %v353_v47 = vpop.f32.mrf.mxu1 }
 0x1af   :  { %v441_v48 = vsub.f32 %v252_v46, %v425_v44  ;;  %v424_v49 = vmul.f32 2.0, %v353_v47  ;;  %481 = vmin.xlane.f32.xlu1 %v2370_v45  ;;  %v2374_v50 = vadd.f32 %v2367_v39, %v438_v43  ;;  %v266_v43 = vpop.xlane.xlu0 %265 }
 0x1b0   :  { %v1845_v53 = vpop.f32.mrf.mxu1 }
 0x1b1   :  { %v440_v54 = vsub.f32 %v250_v34, %v424_v49  ;;  %v427_v56 = vmul.f32 2.0, %v1845_v53  ;;  %479 = vmin.xlane.f32.xlu0 %v2374_v50  ;;  %v2378_v58 = vadd.f32 %v2367_v39, %v441_v48  ;;  %v272_v49 = vpop.xlane.xlu1 %271 }
 0x1b2   :  { %v363_v60 = vpop.f32.mrf.mxu1 }
 0x1b3   :  { %v443_v62 = vsub.f32 %v256_v59, %v427_v56  ;;  %v426_v0 = vmul.f32 2.0, %v363_v60  ;;  %485 = vmin.xlane.f32.xlu1 %v2378_v58  ;;  %v2382_v1 = vadd.f32 %v2367_v39, %v440_v54  ;;  %v270_v60 = vpop.xlane.xlu0 %269 }
 0x1b4   :  { %v1848_v4 = vpop.f32.mrf.mxu1 }
 0x1b5   :  { %v442_v6 = vsub.f32 %v254_v2, %v426_v0  ;;  %v429_v7 = vmul.f32 2.0, %v1848_v4  ;;  %483 = vmin.xlane.f32.xlu0 %v2382_v1  ;;  %v2386_v8 = vadd.f32 %v2367_v39, %v443_v62 }
 0x1b6   :  { %v373_v12 = vpop.f32.mrf.mxu1 }
 0x1b7   :  { %v445_v13 = vsub.f32 %v260_v10, %v429_v7  ;;  %v428_v14 = vmul.f32 2.0, %v373_v12  ;;  %489 = vmin.xlane.f32.xlu1 %v2386_v8  ;;  %v2390_v16 = vadd.f32 %v2367_v39, %v442_v6  ;;  %v276_v6 = vpop.xlane.xlu1 %275 }
 0x1b8   :  { %v1851_v19 = vpop.f32.mrf.mxu1 }
 0x1b9   :  { %v444_v20 = vsub.f32 %v258_v18, %v428_v14  ;;  %v431_v22 = vmul.f32 2.0, %v1851_v19  ;;  %487 = vmin.xlane.f32.xlu0 %v2390_v16  ;;  %v2394_v24 = vadd.f32 %v2367_v39, %v445_v13  ;;  %v274_v14 = vpop.xlane.xlu0 %273 }
 0x1ba   :  { %v383_v26 = vpop.f32.mrf.mxu1 }
 0x1bb   :  { %v447_v28 = vsub.f32 %v264_v25, %v431_v22  ;;  %v430_v30 = vmul.f32 2.0, %v383_v26  ;;  %493 = vmin.xlane.f32.xlu1 %v2394_v24  ;;  %v2398_v31 = vadd.f32 %v2367_v39, %v444_v20  ;;  %v477_v22 = vlaneseq }
 0x1bc   :  { %v1854_v33 = vpop.f32.mrf.mxu1 }
 0x1bd   :  { %v446_v34 = vsub.f32 %v262_v32, %v430_v30  ;;  %v433_v35 = vmul.f32 2.0, %v1854_v33  ;;  %491 = vmin.xlane.f32.xlu0 %v2398_v31  ;;  %v2402_v36 = vadd.f32 %v2367_v39, %v447_v28  ;;  %v2434_v25 = vand.u32 127, %v477_v22 }
 0x1be   :  { %v393_v38 = vpop.f32.mrf.mxu1 }
 0x1bf   :  { %v449_v40 = vsub.f32 %v268_v37, %v433_v35  ;;  %v432_v41 = vmul.f32 2.0, %v393_v38  ;;  %497 = vmin.xlane.f32.xlu1 %v2402_v36  ;;  %v2406_v42 = vadd.f32 %v2367_v39, %v446_v34 }
 0x1c0   :  { %v1857_v44 = vpop.f32.mrf.mxu1 }
 0x1c1   :  { %v448_v46 = vsub.f32 %v266_v43, %v432_v41  ;;  %v435_v47 = vmul.f32 2.0, %v1857_v44  ;;  %495 = vmin.xlane.f32.xlu0 %v2406_v42  ;;  %v2410_v48 = vadd.f32 %v2367_v39, %v449_v40 }
 0x1c2   :  { %v403_v53 = vpop.f32.mrf.mxu1 }
 0x1c3   :  { %v451_v54 = vsub.f32 %v272_v49, %v435_v47  ;;  %v434_v56 = vmul.f32 2.0, %v403_v53  ;;  %501 = vmin.xlane.f32.xlu1 %v2410_v48  ;;  %v2414_v59 = vadd.f32 %v2367_v39, %v448_v46 }
 0x1c4   :  { %v1860_v62 = vpop.f32.mrf.mxu1 }
 0x1c5   :  { %v450_v0 = vsub.f32 %v270_v60, %v434_v56  ;;  %v437_v2 = vmul.f32 2.0, %v1860_v62  ;;  %499 = vmin.xlane.f32.xlu0 %v2414_v59  ;;  %v2418_v4 = vadd.f32 %v2367_v39, %v451_v54 }
 0x1c6   :  { %v413_v7 = vpop.f32.mrf.mxu1 }
 0x1c7   :  { %v453_v10 = vsub.f32 %v276_v6, %v437_v2  ;;  %v436_v12 = vmul.f32 2.0, %v413_v7  ;;  %505 = vmin.xlane.f32.xlu1 %v2418_v4  ;;  %v2422_v13 = vadd.f32 %v2367_v39, %v450_v0 }
 0x1c9   :  { %v452_v18 = vsub.f32 %v274_v14, %v436_v12  ;;  %503 = vmin.xlane.f32.xlu0 %v2422_v13  ;;  %v2426_v19 = vadd.f32 %v2367_v39, %v453_v10 }
 0x1cb   :  { %509 = vmin.xlane.f32.xlu1 %v2426_v19  ;;  %v2430_v20 = vadd.f32 %v2367_v39, %v452_v18 }
 0x1cd   :  { %507 = vmin.xlane.f32.xlu0 %v2430_v20 }
 0x238   :  { %v482_v26 = vpop.xlane.xlu1 %481 }
 0x239   :  { %vm512_vm0 = vcmp.eq.f32.partialorder %v2370_v45, %v482_v26 }
 0x23a   :  { %v2438_v28 = vsel %vm512_vm0, %v2434_v25, 128  ;;  %v480_v30 = vpop.xlane.xlu0 %479 }
 0x23b   :  { %vm511_vm1 = vcmp.eq.f32.partialorder %v2374_v50, %v480_v30  ;;  %v558_v32 = vshra.s32 %v2438_v28, 16 }
 0x23c   :  { %v2443_v39 = vsel %vm511_vm1, %v2434_v25, 128  ;;  %v486_v33 = vpop.xlane.xlu1 %485 }
 0x23d   :  { %vm514_vm2 = vcmp.eq.f32.partialorder %v2378_v58, %v486_v33  ;;  %v2446_v34 = vcvt.s32.f32 %v558_v32  ;;  %v544_v35 = vshra.s32 %v2443_v39, 16 }
 0x23e   :  { %v2450_v45 = vsel %vm514_vm2, %v2434_v25, 128  ;;  %v484_v37 = vpop.xlane.xlu0 %483 }
 0x23f   :  { %vm513_vm3 = vcmp.eq.f32.partialorder %v2382_v1, %v484_v37  ;;  %561 = vmin.xlane.f32.xlu1 %v2446_v34  ;;  %v2454_v50 = vcvt.s32.f32 %v544_v35  ;;  %v586_v38 = vshra.s32 %v2450_v45, 16 }
 0x240   :  { %v2458_v40 = vsel %vm513_vm3, %v2434_v25, 128  ;;  %v490_v58 = vpop.xlane.xlu1 %489 }
 0x241   :  { %vm516_vm4 = vcmp.eq.f32.partialorder %v2386_v8, %v490_v58  ;;  %547 = vmin.xlane.f32.xlu0 %v2454_v50  ;;  %v2462_v41 = vcvt.s32.f32 %v586_v38  ;;  %v572_v43 = vshra.s32 %v2458_v40, 16 }
 0x242   :  { %v2466_v1 = vsel %vm516_vm4, %v2434_v25, 128  ;;  %v488_v44 = vpop.xlane.xlu0 %487 }
 0x243   :  { %vm515_vm5 = vcmp.eq.f32.partialorder %v2390_v16, %v488_v44  ;;  %589 = vmin.xlane.f32.xlu1 %v2462_v41  ;;  %v2470_v46 = vcvt.s32.f32 %v572_v43  ;;  %v614_v47 = vshra.s32 %v2466_v1, 16 }
 0x244   :  { %v2474_v8 = vsel %vm515_vm5, %v2434_v25, 128  ;;  %v494_v49 = vpop.xlane.xlu1 %493 }
 0x245   :  { %vm518_vm6 = vcmp.eq.f32.partialorder %v2394_v24, %v494_v49  ;;  %575 = vmin.xlane.f32.xlu0 %v2470_v46  ;;  %v2478_v53 = vcvt.s32.f32 %v614_v47  ;;  %v600_v54 = vshra.s32 %v2474_v8, 16 }
 0x246   :  { %v2482_v16 = vsel %vm518_vm6, %v2434_v25, 128  ;;  %v492_v56 = vpop.xlane.xlu0 %491 }
 0x247   :  { %vm517_vm7 = vcmp.eq.f32.partialorder %v2398_v31, %v492_v56  ;;  %617 = vmin.xlane.f32.xlu1 %v2478_v53  ;;  %v2486_v60 = vcvt.s32.f32 %v600_v54  ;;  %v642_v62 = vshra.s32 %v2482_v16, 16 }
 0x248   :  { %v2490_v24 = vsel %vm517_vm7, %v2434_v25, 128  ;;  %v498_v0 = vpop.xlane.xlu1 %497 }
 0x249   :  { %vm520_vm8 = vcmp.eq.f32.partialorder %v2402_v36, %v498_v0  ;;  %603 = vmin.xlane.f32.xlu0 %v2486_v60  ;;  %v2494_v2 = vcvt.s32.f32 %v642_v62  ;;  %v628_v6 = vshra.s32 %v2490_v24, 16 }
 0x24a   :  { %v2498_v31 = vsel %vm520_vm8, %v2434_v25, 128  ;;  %v496_v7 = vpop.xlane.xlu0 %495 }
 0x24b   :  { %vm519_vm9 = vcmp.eq.f32.partialorder %v2406_v42, %v496_v7  ;;  %645 = vmin.xlane.f32.xlu1 %v2494_v2  ;;  %v2502_v10 = vcvt.s32.f32 %v628_v6  ;;  %v670_v12 = vshra.s32 %v2498_v31, 16 }
 0x24c   :  { %v2506_v36 = vsel %vm519_vm9, %v2434_v25, 128  ;;  %v502_v14 = vpop.xlane.xlu1 %501 }
 0x24d   :  { %vm522_vm10 = vcmp.eq.f32.partialorder %v2410_v48, %v502_v14  ;;  %631 = vmin.xlane.f32.xlu0 %v2502_v10  ;;  %v2510_v18 = vcvt.s32.f32 %v670_v12  ;;  %v656_v26 = vshra.s32 %v2506_v36, 16  ;;  %v543_v14 = vand.u32 65535, %v2443_v39 }
 0x24e   :  { %v2514_v42 = vsel %vm522_vm10, %v2434_v25, 128  ;;  %v500_v30 = vpop.xlane.xlu0 %499 }
 0x24f   :  { %vm521_vm11 = vcmp.eq.f32.partialorder %v2414_v59, %v500_v30  ;;  %673 = vmin.xlane.f32.xlu1 %v2510_v18  ;;  %v2518_v32 = vcvt.s32.f32 %v656_v26  ;;  %v698_v33 = vshra.s32 %v2514_v42, 16  ;;  %v585_v26 = vand.u32 65535, %v2450_v45 }
 0x250   :  { %v2522_v48 = vsel %vm521_vm11, %v2434_v25, 128  ;;  %v506_v35 = vpop.xlane.xlu1 %505 }
 0x251   :  { %vm524_vm12 = vcmp.eq.f32.partialorder %v2418_v4, %v506_v35  ;;  %659 = vmin.xlane.f32.xlu0 %v2518_v32  ;;  %v2526_v37 = vcvt.s32.f32 %v698_v33  ;;  %v684_v38 = vshra.s32 %v2522_v48, 16  ;;  %v571_v35 = vand.u32 65535, %v2458_v40 }
 0x252   :  { %v2530_v59 = vsel %vm524_vm12, %v2434_v25, 128  ;;  %v504_v58 = vpop.xlane.xlu0 %503 }
 0x253   :  { %vm523_vm13 = vcmp.eq.f32.partialorder %v2422_v13, %v504_v58  ;;  %701 = vmin.xlane.f32.xlu1 %v2526_v37  ;;  %v2534_v43 = vcvt.s32.f32 %v684_v38  ;;  %v726_v44 = vshra.s32 %v2530_v59, 16 }
 0x254   :  { %v2538_v4 = vsel %vm523_vm13, %v2434_v25, 128  ;;  %v510_v47 = vpop.xlane.xlu1 %509 }
 0x255   :  { %vm526_vm14 = vcmp.eq.f32.partialorder %v2426_v19, %v510_v47  ;;  %687 = vmin.xlane.f32.xlu0 %v2534_v43  ;;  %v2542_v49 = vcvt.s32.f32 %v726_v44  ;;  %v712_v54 = vshra.s32 %v2538_v4, 16  ;;  %v545_v44 = vcvt.s32.f32 %v543_v14 }
 0x256   :  { %v2546_v13 = vsel %vm526_vm14, %v2434_v25, 128  ;;  %v508_v56 = vpop.xlane.xlu0 %507  ;;  %v587_v47 = vcvt.s32.f32 %v585_v26 }
 0x257   :  { %vm525_vm15 = vcmp.eq.f32.partialorder %v2430_v20, %v508_v56  ;;  %729 = vmin.xlane.f32.xlu1 %v2542_v49  ;;  %v2550_v62 = vcvt.s32.f32 %v712_v54  ;;  %v754_v0 = vshra.s32 %v2546_v13, 16  ;;  %v557_v20 = vand.u32 65535, %v2438_v28 }
 0x258   :  { %v2554_v19 = vsel %vm525_vm15, %v2434_v25, 128  ;;  %v613_v28 = vand.u32 65535, %v2466_v1  ;;  %v573_v56 = vcvt.s32.f32 %v571_v35 }
 0x259   :  { %715 = vmin.xlane.f32.xlu0 %v2550_v62  ;;  %v2557_v6 = vcvt.s32.f32 %v754_v0  ;;  %v740_v7 = vshra.s32 %v2554_v19, 16  ;;  %v559_v33 = vcvt.s32.f32 %v557_v20 }
 0x25b   :  { %757 = vmin.xlane.f32.xlu1 %v2557_v6  ;;  %v2561_v12 = vcvt.s32.f32 %v740_v7  ;;  %v615_v7 = vcvt.s32.f32 %v613_v28 }
 0x25d   :  { %743 = vmin.xlane.f32.xlu0 %v2561_v12 }
 0x2c8   :  { %v2567_v30 = vpop.xlane.xlu1 %561 }
 0x2c9   :  { %vm563_vm0 = vcmp.eq.f32.partialorder %v2446_v34, %v2567_v30  ;;  %v599_v34 = vand.u32 65535, %v2474_v8 }
 0x2ca   :  { %v2572_v38 = vpop.xlane.xlu0 %547  ;;  %v564_v58 = vsel %vm563_vm0, %v559_v33, inf }
 0x2cb   :  { %565 = vmin.xlane.f32.xlu1 %v564_v58  ;;  %vm549_vm1 = vcmp.eq.f32.partialorder %v2454_v50, %v2572_v38  ;;  %v641_v50 = vand.u32 65535, %v2482_v16  ;;  %v601_v14 = vcvt.s32.f32 %v599_v34 }
 0x2cc   :  { %v2577_v39 = vpop.xlane.xlu1 %589  ;;  %v550_v45 = vsel %vm549_vm1, %v545_v44, inf }
 0x2cd   :  { %551 = vmin.xlane.f32.xlu0 %v550_v45  ;;  %vm591_vm2 = vcmp.eq.f32.partialorder %v2462_v41, %v2577_v39  ;;  %v627_v41 = vand.u32 65535, %v2490_v24  ;;  %v643_v33 = vcvt.s32.f32 %v641_v50 }
 0x2ce   :  { %v2582_v40 = vpop.xlane.xlu0 %575  ;;  %v592_v54 = vsel %vm591_vm2, %v587_v47, inf }
 0x2cf   :  { %593 = vmin.xlane.f32.xlu1 %v592_v54  ;;  %vm577_vm3 = vcmp.eq.f32.partialorder %v2470_v46, %v2582_v40  ;;  %v669_v46 = vand.u32 65535, %v2498_v31  ;;  %v629_v58 = vcvt.s32.f32 %v627_v41 }
 0x2d0   :  { %v2587_v1 = vpop.xlane.xlu1 %617  ;;  %v578_v0 = vsel %vm577_vm3, %v573_v56, inf }
 0x2d1   :  { %579 = vmin.xlane.f32.xlu0 %v578_v0  ;;  %vm619_vm4 = vcmp.eq.f32.partialorder %v2478_v53, %v2587_v1  ;;  %v655_v53 = vand.u32 65535, %v2506_v36  ;;  %v671_v28 = vcvt.s32.f32 %v669_v46 }
 0x2d2   :  { %v2592_v8 = vpop.xlane.xlu0 %603  ;;  %v620_v20 = vsel %vm619_vm4, %v615_v7, inf }
 0x2d3   :  { %621 = vmin.xlane.f32.xlu1 %v620_v20  ;;  %vm605_vm5 = vcmp.eq.f32.partialorder %v2486_v60, %v2592_v8  ;;  %v697_v60 = vand.u32 65535, %v2514_v42  ;;  %v657_v47 = vcvt.s32.f32 %v655_v53  ;;  %v988_v53 = vld [vmem:[%s3145_s5 + $0xe0] sm:$0xff] }
 0x2d4   :  { %v2597_v16 = vpop.xlane.xlu1 %645  ;;  %v606_v26 = vsel %vm605_vm5, %v601_v14, inf }
 0x2d5   :  { %607 = vmin.xlane.f32.xlu0 %v606_v26  ;;  %vm647_vm6 = vcmp.eq.f32.partialorder %v2494_v2, %v2597_v16  ;;  %v683_v2 = vand.u32 65535, %v2522_v48  ;;  %v699_v54 = vcvt.s32.f32 %v697_v60  ;;  %v984_v60 = vld [vmem:[%s3145_s5 + $0xc0] sm:$0xff] }
 0x2d6   :  { %v2602_v24 = vpop.xlane.xlu0 %631  ;;  %v648_v35 = vsel %vm647_vm6, %v643_v33, inf  ;;  %v990_v33 = vld [vmem:[%s3145_s5 + $0xf0] sm:$0xff] }
 0x2d7   :  { %649 = vmin.xlane.f32.xlu1 %v648_v35  ;;  %vm633_vm7 = vcmp.eq.f32.partialorder %v2502_v10, %v2602_v24  ;;  %v725_v10 = vand.u32 65535, %v2530_v59  ;;  %v685_v50 = vcvt.s32.f32 %v683_v2  ;;  %v986_v35 = vld [vmem:[%s3145_s5 + $0xd0] sm:$0xff]  ;;  %v981_v2 = vld [vmem:[%s3145_s5 + $0xa8] sm:$0xff] }
 0x2d8   :  { %v2607_v31 = vpop.xlane.xlu1 %673  ;;  %v634_v44 = vsel %vm633_vm7, %v629_v58, inf  ;;  %v985_v58 = vld [vmem:[%s3145_s5 + $0xc8] sm:$0xff] }
 0x2d9   :  { %635 = vmin.xlane.f32.xlu0 %v634_v44  ;;  %vm675_vm8 = vcmp.eq.f32.partialorder %v2510_v18, %v2607_v31  ;;  %v711_v18 = vand.u32 65535, %v2538_v4  ;;  %v727_v7 = vcvt.s32.f32 %v725_v10  ;;  %v983_v44 = vld [vmem:[%s3145_s5 + $0xb8] sm:$0xff]  ;;  %v978_v10 = vld [vmem:[%s3145_s5 + $0x90] sm:$0xff] }
 0x2da   :  { %v2612_v36 = vpop.xlane.xlu0 %659  ;;  %v676_v45 = vsel %vm675_vm8, %v671_v28, inf  ;;  %v982_v28 = vld [vmem:[%s3145_s5 + $0xb0] sm:$0xff] }
 0x2db   :  { %677 = vmin.xlane.f32.xlu1 %v676_v45  ;;  %vm661_vm9 = vcmp.eq.f32.partialorder %v2518_v32, %v2612_v36  ;;  %v753_v32 = vand.u32 65535, %v2546_v13  ;;  %v713_v20 = vcvt.s32.f32 %v711_v18  ;;  %v980_v45 = vld [vmem:[%s3145_s5 + $0xa0] sm:$0xff]  ;;  %v975_v18 = vld [vmem:[%s3145_s5 + $0x78] sm:$0xff] }
 0x2dc   :  { %v2617_v42 = vpop.xlane.xlu1 %701  ;;  %v662_v34 = vsel %vm661_vm9, %v657_v47, inf  ;;  %v979_v47 = vld [vmem:[%s3145_s5 + $0x98] sm:$0xff] }
 0x2dd   :  { %663 = vmin.xlane.f32.xlu0 %v662_v34  ;;  %vm703_vm10 = vcmp.eq.f32.partialorder %v2526_v37, %v2617_v42  ;;  %v739_v37 = vand.u32 65535, %v2554_v19  ;;  %v755_v14 = vcvt.s32.f32 %v753_v32  ;;  %v977_v34 = vld [vmem:[%s3145_s5 + $0x88] sm:$0xff]  ;;  %v972_v32 = vld [vmem:[%s3145_s5 + $0x60] sm:$0xff] }
 0x2de   :  { %v2622_v48 = vpop.xlane.xlu0 %687  ;;  %v704_v56 = vsel %vm703_vm10, %v699_v54, inf  ;;  %v976_v54 = vld [vmem:[%s3145_s5 + $0x80] sm:$0xff] }
 0x2df   :  { %705 = vmin.xlane.f32.xlu1 %v704_v56  ;;  %vm689_vm11 = vcmp.eq.f32.partialorder %v2534_v43, %v2622_v48  ;;  %v741_v19 = vcvt.s32.f32 %v739_v37  ;;  %v974_v56 = vld [vmem:[%s3145_s5 + $0x70] sm:$0xff]  ;;  %v969_v37 = vld [vmem:[%s3145_s5 + $0x48] sm:$0xff] }
 0x2e0   :  { %v2627_v59 = vpop.xlane.xlu1 %729  ;;  %v690_v0 = vsel %vm689_vm11, %v685_v50, inf  ;;  %v973_v50 = vld [vmem:[%s3145_s5 + $0x68] sm:$0xff] }
 0x2e1   :  { %691 = vmin.xlane.f32.xlu0 %v690_v0  ;;  %vm731_vm12 = vcmp.eq.f32.partialorder %v2542_v49, %v2627_v59  ;;  %v971_v0 = vld [vmem:[%s3145_s5 + $0x58] sm:$0xff] }
 0x2e2   :  { %v2632_v4 = vpop.xlane.xlu0 %715  ;;  %v732_v41 = vsel %vm731_vm12, %v727_v7, inf  ;;  %v970_v7 = vld [vmem:[%s3145_s5 + $0x50] sm:$0xff] }
 0x2e3   :  { %733 = vmin.xlane.f32.xlu1 %v732_v41  ;;  %vm717_vm13 = vcmp.eq.f32.partialorder %v2550_v62, %v2632_v4  ;;  %v991_v62 = vld [vmem:[%s3145_s5 + $0xf8] sm:$0xff]  ;;  %v968_v41 = vld [vmem:[%s3145_s5 + $0x40] sm:$0xff] }
 0x2e4   :  { %v2636_v43 = vpop.xlane.xlu1 %757  ;;  %v718_v13 = vsel %vm717_vm13, %v713_v20, inf  ;;  %1004 = vmatprep.subr.mxu1 %v991_v62  ;;  %v967_v20 = vld [vmem:[%s3145_s5 + $0x38] sm:$0xff]  ;;  %v2735_v62 = vshrl.u32 %v477_v22, 7  ;;  %v638_v22 = vcvt.f32.s32 %v2602_v24 }
 0x2e5   :  { %719 = vmin.xlane.f32.xlu0 %v718_v13  ;;  %vm759_vm14 = vcmp.eq.f32.partialorder %v2557_v6, %v2636_v43  ;;  %v989_v6 = vld [vmem:[%s3145_s5 + $0xe8] sm:$0xff]  ;;  %1005 = vmatpush1.msra.mxu1 %v990_v33  ;;  %v966_v13 = vld [vmem:[%s3145_s5 + $0x30] sm:$0xff]  ;;  %v568_v33 = vcvt.f32.s32 %v2567_v30 }
 0x2e6   :  { %v2640_v46 = vpop.xlane.xlu0 %743  ;;  %v760_v49 = vsel %vm759_vm14, %v755_v14, inf  ;;  %1006 = vmatprep.subr.mxu1 %v989_v6  ;;  %v965_v14 = vld [vmem:[%s3145_s5 + $0x28] sm:$0xff]  ;;  %v1184_v6 = vadd.s32 8, %v2735_v62  ;;  %vm1535_vm1 = vcmp.eq.s32.totalorder %v2735_v62, %v2434_v25 }
 0x2e7   :  { %761 = vmin.xlane.f32.xlu1 %v760_v49  ;;  %vm745_vm15 = vcmp.eq.f32.partialorder %v2561_v12, %v2640_v46  ;;  %v987_v12 = vld [vmem:[%s3145_s5 + $0xd8] sm:$0xff]  ;;  %1007 = vmatpush1.msra.mxu1 %v988_v53  ;;  %v964_v49 = vld [vmem:[%s3145_s5 + $0x20] sm:$0xff]  ;;  %v554_v53 = vcvt.f32.s32 %v2572_v38  ;;  %v666_v38 = vcvt.f32.s32 %v2612_v36  ;;  %v1185_v36 = vadd.s32 16, %v2735_v62 }
 0x2e8   :  { %v746_v26 = vsel %vm745_vm15, %v741_v19, inf  ;;  %1008 = vmatprep.subr.mxu1 %v987_v12  ;;  %v963_v19 = vld [vmem:[%s3145_s5 + $0x18] sm:$0xff]  ;;  %v596_v12 = vcvt.f32.s32 %v2577_v39  ;;  %vm1536_vm0 = vcmp.eq.s32.totalorder %v1184_v6, %v2434_v25 }
 0x2e9   :  { %747 = vmin.xlane.f32.xlu0 %v746_v26  ;;  %1009 = vmatpush1.msra.mxu1 %v986_v35  ;;  %v962_v26 = vld [vmem:[%s3145_s5 + $0x10] sm:$0xff]  ;;  %v582_v35 = vcvt.f32.s32 %v2582_v40  ;;  %v555_v30 = vshll.u32 %v554_v53, 16  ;;  %vm1537_vm3 = vcmp.eq.s32.totalorder %v1185_v36, %v2434_v25 }
 0x2ea   :  { %1010 = vmatprep.subr.mxu1 %v985_v58  ;;  %v624_v58 = vcvt.f32.s32 %v2587_v1  ;;  %v708_v1 = vcvt.f32.s32 %v2617_v42 }
 0x2eb   :  { %1011 = vmatpush1.msra.mxu1 %v984_v60  ;;  %v610_v60 = vcvt.f32.s32 %v2592_v8 }
 0x2ec   :  { %1012 = vmatprep.subr.mxu1 %v983_v44  ;;  %v652_v44 = vcvt.f32.s32 %v2597_v16  ;;  %v625_v40 = vshll.u32 %v624_v58, 16  ;;  %v694_v16 = vcvt.f32.s32 %v2622_v48 }
 0x2ed   :  { %1013 = vmatpush1.msra.mxu1 %v982_v28  ;;  %v569_v28 = vshll.u32 %v568_v33, 16  ;;  %v611_v8 = vshll.u32 %v610_v60, 16  ;;  %v722_v33 = vcvt.f32.s32 %v2632_v4 }
 0x2ee   :  { %1014 = vmatprep.subr.mxu1 %v981_v2  ;;  %v597_v2 = vshll.u32 %v596_v12, 16 }
 0x2ef   :  { %1015 = vmatpush1.msra.mxu1 %v980_v45  ;;  %v680_v45 = vcvt.f32.s32 %v2607_v31 }
 0x2f0   :  { %1016 = vmatprep.subr.mxu1 %v979_v47  ;;  %v583_v47 = vshll.u32 %v582_v35, 16 }
 0x2f1   :  { %1017 = vmatpush1.msra.mxu1 %v978_v10 }
 0x2f2   :  { %1018 = vmatprep.subr.mxu1 %v977_v34  ;;  %v2750_v34 = vshll.u32 %v652_v44, 16  ;;  %v2001_v44 = vmov 1.0  }
 0x2f3   :  { %1019 = vmatpush1.msra.mxu1 %v976_v54  ;;  %v1186_v54 = vadd.s32 24, %v2735_v62 }
 0x2f4   :  { %1020 = vmatprep.subr.mxu1 %v975_v18  ;;  %v2754_v18 = vshll.u32 %v638_v22, 16 }
 0x2f5   :  { %1021 = vmatpush1.msra.mxu1 %v974_v56  ;;  %vm1538_vm2 = vcmp.eq.s32.totalorder %v1186_v54, %v2434_v25 }
 0x2f6   :  { %1022 = vmatprep.subr.mxu1 %v973_v50  ;;  %v2757_v50 = vshll.u32 %v680_v45, 16 }
 0x2f7   :  { %1023 = vmatpush1.msra.mxu1 %v972_v32  ;;  %v2759_v32 = vshll.u32 %v666_v38, 16 }
 0x2f8   :  { %1024 = vmatprep.subr.mxu1 %v971_v0  ;;  %v2763_v0 = vshll.u32 %v708_v1, 16 }
 0x2f9   :  { %1025 = vmatpush1.msra.mxu1 %v970_v7 }
 0x2fa   :  { %1026 = vmatprep.subr.mxu1 %v969_v37 }
 0x2fb   :  { %1027 = vmatpush1.msra.mxu1 %v968_v41  ;;  %v2765_v41 = vshll.u32 %v694_v16, 16 }
 0x2fc   :  { %1028 = vmatprep.subr.mxu1 %v967_v20  ;;  %v736_v20 = vcvt.f32.s32 %v2627_v59  ;;  %v1187_v59 = vadd.s32 32, %v2735_v62 }
 0x2fd   :  { %1029 = vmatpush1.msra.mxu1 %v966_v13 }
 0x2fe   :  { %1030 = vmatprep.subr.mxu1 %v965_v14  ;;  %v2770_v14 = vadd.s32 40, %v2735_v62  ;;  %v2783_v4 = vshll.u32 %v736_v20, 16  ;;  %vm1539_vm7 = vcmp.eq.s32.totalorder %v1187_v59, %v2434_v25 }
 0x2ff   :  { %1031 = vmatpush1.msra.mxu1 %v964_v49 }
 0x300   :  { %1032 = vmatprep.subr.mxu1 %v963_v19  ;;  %vm1540_vm6 = vcmp.eq.s32.totalorder %v2770_v14, %v2434_v25 }
 0x301   :  { %1033 = vmatpush1.msra.mxu1 %v962_v26 }
 0x354   :  { %v566_v39 = vpop.xlane.xlu1 %565 }
 0x355   :  { %v567_v10 = vcvt.f32.s32 %v566_v39  ;;  %v2789_v39 = vshll.u32 %v722_v33, 16 }
 0x356   :  { %v552_v24 = vpop.xlane.xlu0 %551 }
 0x357   :  { %v570_v56 = vadd.s32 %v569_v28, %v567_v10  ;;  %v553_v31 = vcvt.f32.s32 %v552_v24  ;;  %v764_v28 = vcvt.f32.s32 %v2636_v43 }
 0x358   :  { %v594_v42 = vpop.xlane.xlu1 %593 }
 0x359   :  { %v1552_v48 = vcvt.s32.f32 %v570_v56  ;;  %v556_v7 = vadd.s32 %v555_v30, %v553_v31  ;;  %v595_v37 = vcvt.f32.s32 %v594_v42  ;;  %vm768_vm4 = vcmp.eq.s32.totalorder %v2434_v25, %v570_v56 }
 0x35a   :  { %v580_v13 = vpop.xlane.xlu0 %579  ;;  %v1189_v31 = vadd.s32 48, %v2735_v62 }
 0x35b   :  { %v1551_v49 = vcvt.s32.f32 %v556_v7  ;;  %v598_v19 = vadd.s32 %v597_v2, %v595_v37  ;;  %v581_v26 = vcvt.f32.s32 %v580_v13  ;;  %vm767_vm5 = vcmp.eq.s32.totalorder %v2434_v25, %v556_v7 }
 0x35c   :  { %v622_v53 = vpop.xlane.xlu1 %621  ;;  %v1568_v12 = vsel %vm1536_vm0, %v1552_v48, 0.0  ;;  %1893 = vmatprep.mubr.msk.f32.mxu0 %vm767_vm5, %v2001_v44  ;;  %v750_v37 = vcvt.f32.s32 %v2640_v46  ;;  %vm1541_vm13 = vcmp.eq.s32.totalorder %v1189_v31, %v2434_v25  ;;  %v1191_v46 = vadd.s32 64, %v2735_v62 }
 0x35d   :  { %v1567_v35 = vsel %vm1535_vm1, %v1551_v49, 0.0  ;;  %v584_v58 = vadd.s32 %v583_v47, %v581_v26  ;;  %v623_v60 = vcvt.f32.s32 %v622_v53  ;;  %v1554_v30 = vcvt.s32.f32 %v598_v19  ;;  %1894 = vmatmul.mubr.msk.f32.vlgmr.msra.gmra.mxu0 %vm768_vm4, %v2001_v44 }
 0x35e   :  { %v1583_v22 = vadd.f32 %v1568_v12, %v1567_v35  ;;  %v608_v2 = vpop.xlane.xlu0 %607  ;;  %v1190_v47 = vadd.s32 56, %v2735_v62  ;;  %vm770_vm9 = vcmp.eq.s32.totalorder %v2434_v25, %v598_v19  ;;  %vm1543_vm0 = vcmp.eq.s32.totalorder %v1191_v46, %v2434_v25 }
 0x35f   :  { %v1553_v6 = vcvt.s32.f32 %v584_v58  ;;  %v626_v45 = vadd.s32 %v625_v40, %v623_v60  ;;  %v609_v38 = vcvt.f32.s32 %v608_v2  ;;  %vm769_vm8 = vcmp.eq.s32.totalorder %v2434_v25, %v584_v58 }
 0x360   :  { %v650_v1 = vpop.xlane.xlu1 %649  ;;  %1896 = vmatprep.mubr.msk.f32.mxu0 %vm769_vm8, %v2001_v44  ;;  %v2798_v40 = vshll.u32 %v764_v28, 16  ;;  %v1570_v24 = vsel %vm1538_vm2, %v1554_v30, 0.0  ;;  %vm1542_vm10 = vcmp.eq.s32.totalorder %v1190_v47, %v2434_v25  ;;  %v1192_v58 = vadd.s32 72, %v2735_v62 }
 0x361   :  { %v1569_v43 = vsel %vm1537_vm3, %v1553_v6, 0.0  ;;  %v612_v10 = vadd.s32 %v611_v8, %v609_v38  ;;  %v651_v16 = vcvt.f32.s32 %v650_v1  ;;  %1897 = vmatmul.mubr.msk.f32.gmra.mxu0 %vm770_vm9, %v2001_v44  ;;  %v1556_v48 = vcvt.s32.f32 %v626_v45 }
 0x362   :  { %v1584_v56 = vadd.f32 %v1583_v22, %v1569_v43  ;;  %v636_v42 = vpop.xlane.xlu0 %635  ;;  %vm772_vm12 = vcmp.eq.s32.totalorder %v2434_v25, %v626_v45  ;;  %v1194_v60 = vadd.s32 88, %v2735_v62  ;;  %v1193_v6 = vadd.s32 80, %v2735_v62 }
 0x363   :  { %v1555_v36 = vcvt.s32.f32 %v612_v10  ;;  %v654_v8 = vadd.s32 %v2750_v34, %v651_v16  ;;  %v637_v7 = vcvt.f32.s32 %v636_v42  ;;  %vm771_vm11 = vcmp.eq.s32.totalorder %v2434_v25, %v612_v10 }
 0x364   :  { %v1585_v20 = vadd.f32 %v1584_v56, %v1570_v24  ;;  %v678_v13 = vpop.xlane.xlu1 %677  ;;  %1899 = vmatprep.mubr.msk.f32.mxu0 %vm771_vm11, %v2001_v44  ;;  %v1572_v53 = vsel %vm1540_vm6, %v1556_v48, 0.0  ;;  %vm1544_vm1 = vcmp.eq.s32.totalorder %v1192_v58, %v2434_v25  ;;  %vm1546_vm2 = vcmp.eq.s32.totalorder %v1194_v60, %v2434_v25 }
 0x365   :  { %v1571_v54 = vsel %vm1539_vm7, %v1555_v36, 0.0  ;;  %v640_v49 = vadd.s32 %v2754_v18, %v637_v7  ;;  %v679_v19 = vcvt.f32.s32 %v678_v13  ;;  %v1558_v26 = vcvt.s32.f32 %v654_v8  ;;  %1900 = vmatmul.mubr.msk.f32.gmra.mxu0 %vm772_vm12, %v2001_v44 }
 0x366   :  { %v1586_v34 = vadd.f32 %v1585_v20, %v1571_v54  ;;  %v664_v33 = vpop.xlane.xlu0 %663  ;;  %vm774_vm15 = vcmp.eq.s32.totalorder %v2434_v25, %v654_v8  ;;  %vm1545_vm5 = vcmp.eq.s32.totalorder %v1193_v6, %v2434_v25  ;;  %v751_v20 = vshll.u32 %v750_v37, 16 }
 0x367   :  { %v1557_v59 = vcvt.s32.f32 %v640_v49  ;;  %v682_v18 = vadd.s32 %v2757_v50, %v679_v19  ;;  %v665_v12 = vcvt.f32.s32 %v664_v33  ;;  %vm773_vm14 = vcmp.eq.s32.totalorder %v2434_v25, %v640_v49 }
 0x368   :  { %v1587_v35 = vadd.f32 %v1586_v34, %v1572_v53  ;;  %v706_v28 = vpop.xlane.xlu1 %705  ;;  %1902 = vmatprep.mubr.msk.f32.mxu0 %vm773_vm14, %v2001_v44  ;;  %v1574_v50 = vsel %vm1542_vm10, %v1558_v26, 0.0  ;;  %v1196_v54 = vadd.s32 104, %v2735_v62  ;;  %v1197_v37 = vadd.s32 112, %v2735_v62 }
 0x369   :  { %v1573_v22 = vsel %vm1541_vm13, %v1557_v59, 0.0  ;;  %v668_v30 = vadd.s32 %v2759_v32, %v665_v12  ;;  %v707_v2 = vcvt.f32.s32 %v706_v28  ;;  %1903 = vmatmul.mubr.msk.f32.gmra.mxu0 %vm774_vm15, %v2001_v44  ;;  %v1560_v38 = vcvt.s32.f32 %v682_v18 }
 0x36a   :  { %v1588_v14 = vadd.f32 %v1587_v35, %v1573_v22  ;;  %v692_v45 = vpop.xlane.xlu0 %691  ;;  %vm776_vm4 = vcmp.eq.s32.totalorder %v2434_v25, %v682_v18  ;;  %vm1548_vm9 = vcmp.eq.s32.totalorder %v1196_v54, %v2434_v25  ;;  %v1198_v35 = vadd.s32 120, %v2735_v62 }
 0x36b   :  { %v1559_v1 = vcvt.s32.f32 %v668_v30  ;;  %v710_v32 = vadd.s32 %v2763_v0, %v707_v2  ;;  %v693_v43 = vcvt.f32.s32 %v692_v45  ;;  %vm775_vm3 = vcmp.eq.s32.totalorder %v2434_v25, %v668_v30 }
 0x36c   :  { %v1589_v10 = vadd.f32 %v1588_v14, %v1574_v50  ;;  %v734_v47 = vpop.xlane.xlu1 %733  ;;  %1905 = vmatprep.mubr.msk.f32.mxu0 %vm775_vm3, %v2001_v44  ;;  %v1195_v0 = vadd.s32 96, %v2735_v62  ;;  %v1576_v36 = vsel %vm1544_vm1, %v1560_v38, 0.0  ;;  %vm1549_vm12 = vcmp.eq.s32.totalorder %v1197_v37, %v2434_v25 }
 0x36d   :  { %v1575_v16 = vsel %vm1543_vm0, %v1559_v1, 0.0  ;;  %v696_v24 = vadd.s32 %v2765_v41, %v693_v43  ;;  %v735_v56 = vcvt.f32.s32 %v734_v47  ;;  %v1562_v42 = vcvt.s32.f32 %v710_v32  ;;  %1906 = vmatmul.mubr.msk.f32.gmra.mxu0 %vm776_vm4, %v2001_v44 }
 0x36e   :  { %v1590_v31 = vadd.f32 %v1589_v10, %v1575_v16  ;;  %v720_v48 = vpop.xlane.xlu0 %719  ;;  %vm778_vm7 = vcmp.eq.s32.totalorder %v2434_v25, %v710_v32  ;;  %vm1547_vm8 = vcmp.eq.s32.totalorder %v1195_v0, %v2434_v25  ;;  %vm1550_vm14 = vcmp.eq.s32.totalorder %v1198_v35, %v2434_v25 }
 0x36f   :  { %v1561_v8 = vcvt.s32.f32 %v696_v24  ;;  %v738_v41 = vadd.s32 %v2783_v4, %v735_v56  ;;  %v721_v7 = vcvt.f32.s32 %v720_v48  ;;  %vm777_vm6 = vcmp.eq.s32.totalorder %v2434_v25, %v696_v24  ;;  %v961_v56 = vld [vmem:[%s3145_s5 + $0x8] sm:$0xff] }
 0x370   :  { %v1591_v13 = vadd.f32 %v1590_v31, %v1576_v36  ;;  %v762_v49 = vpop.xlane.xlu1 %761  ;;  %1908 = vmatprep.mubr.msk.f32.mxu0 %vm777_vm6, %v2001_v44  ;;  %v1578_v46 = vsel %vm1546_vm2, %v1562_v42, 0.0  ;;  %1034 = vmatprep.subr.mxu1 %v961_v56  ;;  %v2002_v31 = vmov 0.0   ;;  %vm1264_vm0 = vcmp.lt.s32.totalorder %v2434_v25, 48 }
 0x371   :  { %v1577_v19 = vsel %vm1545_vm5, %v1561_v8, 0.0  ;;  %v724_v34 = vadd.s32 %v2789_v39, %v721_v7  ;;  %v763_v26 = vcvt.f32.s32 %v762_v49  ;;  %1909 = vmatmul.mubr.msk.f32.gmra.mxu0 %vm778_vm7, %v2001_v44  ;;  %v1564_v53 = vcvt.s32.f32 %v738_v41  ;;  %1068 = vmatprep.mubr.f32.mxu1 %v2002_v31 }
 0x372   :  { %v1592_v4 = vadd.f32 %v1591_v13, %v1577_v19  ;;  %v748_v33 = vpop.xlane.xlu0 %747  ;;  %vm780_vm11 = vcmp.eq.s32.totalorder %v2434_v25, %v738_v41 }
 0x373   :  { %v1563_v59 = vcvt.s32.f32 %v724_v34  ;;  %v766_v39 = vadd.s32 %v2798_v40, %v763_v26  ;;  %v749_v18 = vcvt.f32.s32 %v748_v33  ;;  %vm779_vm10 = vcmp.eq.s32.totalorder %v2434_v25, %v724_v34 }
 0x374   :  { %v1593_v12 = vadd.f32 %v1592_v4, %v1578_v46  ;;  %1911 = vmatprep.mubr.msk.f32.mxu0 %vm779_vm10, %v2001_v44  ;;  %v1580_v40 = vsel %vm1548_vm9, %v1564_v53, 0.0 }
 0x375   :  { %v1579_v58 = vsel %vm1547_vm8, %v1563_v59, 0.0  ;;  %v752_v60 = vadd.s32 %v751_v20, %v749_v18  ;;  %1912 = vmatmul.mubr.msk.f32.gmra.mxu0 %vm780_vm11, %v2001_v44  ;;  %v1566_v22 = vcvt.s32.f32 %v766_v39  ;;  %vm782_vm15 = vcmp.eq.s32.totalorder %v2434_v25, %v766_v39 }
 0x376   :  { %v1594_v28 = vadd.f32 %v1593_v12, %v1579_v58 }
 0x377   :  { %v1565_v30 = vcvt.s32.f32 %v752_v60  ;;  %vm781_vm13 = vcmp.eq.s32.totalorder %v2434_v25, %v752_v60  ;;  %v1582_v6 = vsel %vm1550_vm14, %v1566_v22, 0.0 }
 0x378   :  { %v1595_v2 = vadd.f32 %v1594_v28, %v1580_v40  ;;  %1914 = vmatprep.mubr.msk.f32.mxu0 %vm781_vm13, %v2001_v44 }
 0x379   :  { %v1581_v50 = vsel %vm1549_vm12, %v1565_v30, 0.0  ;;  %1915 = vmatmul.mubr.msk.f32.gmra.mxu0 %vm782_vm15, %v2001_v44  ;;  %v960_v44 = vld [vmem:[%s3145_s5] sm:$0xff] }
 0x37a   :  { %v1596_v14 = vadd.f32 %v1595_v2, %v1581_v50  ;;  %1035 = vmatpush1.msra.mxu1 %v960_v44 }
 0x37c   :  { %v1597_v45 = vadd.f32 %v1596_v14, %v1582_v6 }
 0x37e   :  { %v1598_v38 = vrot.slane %v1597_v45, 4 }
 0x380   :  { %v1599_v1 = vadd.f32 %v1598_v38, %v1597_v45 }
 0x382   :  { %v1600_v32 = vrot.slane %v1599_v1, 2 }
 0x384   :  { %v1601_v43 = vadd.f32 %v1600_v32, %v1599_v1 }
 0x386   :  { %v1602_v10 = vrot.slane %v1601_v43, 1 }
 0x388   :  { %v1603_v47 = vadd.f32 %v1602_v10, %v1601_v43 }
 0x38a   :  { %v1917_v16 = vtrunc.f32 %v1603_v47 }
 0x38c   :  { %v1918_v24 = vcvt.f32.s32 %v1917_v16 }
 0x38e   :  { %1605 = vst [vmem:[%s3146_s7] sm:$0x1] %v1918_v24 }
 0x41d   :  { %v1895_v42 = vpop.f32.mrf.mxu0 }
 0x41e   :  { %v1466_v48 = vsub.f32 %v1895_v42, %v2272_v52 }
 0x41f   :  { %v881_v0 = vpop.f32.mrf.mxu0 }
 0x420   :  { %v1465_v36 = vsub.f32 %v881_v0, %v2269_v51  ;;  %1069 = vmatmul.mubr.f32.vlgmr.msra.gmra.mxu1 %v881_v0  ;;  %v1498_v20 = vmul.f32 %v1466_v48, %v1466_v48 }
 0x421   :  { %v1898_v8 = vpop.f32.mrf.mxu0  ;;  %1074 = vmatprep.mubr.f32.mxu1 %v2002_v31 }
 0x422   :  { %v1497_v41 = vmul.f32 %v1465_v36, %v1465_v36  ;;  %v1468_v19 = vsub.f32 %v1898_v8, %v2278_v55 }
 0x423   :  { %v891_v7 = vpop.f32.mrf.mxu0 }
 0x424   :  { %v1467_v13 = vsub.f32 %v891_v7, %v2282_v57  ;;  %1075 = vmatmul.mubr.f32.gmra.mxu1 %v1895_v42  ;;  %v1513_v49 = vadd.f32 %v1498_v20, %v1497_v41  ;;  %v1500_v37 = vmul.f32 %v1468_v19, %v1468_v19 }
 0x425   :  { %v1901_v54 = vpop.f32.mrf.mxu0  ;;  %1080 = vmatprep.mubr.f32.mxu1 %v2002_v31 }
 0x426   :  { %v1499_v34 = vmul.f32 %v1467_v13, %v1467_v13  ;;  %v1470_v52 = vsub.f32 %v1901_v54, %v2290_v61 }
 0x427   :  { %v901_v51 = vpop.f32.mrf.mxu0 }
 0x428   :  { %v1514_v26 = vadd.f32 %v1513_v49, %v1499_v34  ;;  %v1469_v46 = vsub.f32 %v901_v51, %v2294_v63  ;;  %1081 = vmatmul.mubr.f32.gmra.mxu1 %v891_v7  ;;  %v1486_v57 = vmul.f32 0.0, %v1470_v52 }
 0x429   :  { %v1904_v4 = vpop.f32.mrf.mxu0  ;;  %1086 = vmatprep.mubr.f32.mxu1 %v2002_v31 }
 0x42a   :  { %v1485_v33 = vmul.f32 0.0, %v1469_v46  ;;  %v1472_v53 = vsub.f32 %v1904_v4, %v2302_v3  ;;  %v1515_v39 = vadd.f32 %v1514_v26, %v1500_v37  ;;  %v1502_v63 = vmul.f32 %v1486_v57, %v1486_v57 }
 0x42b   :  { %v911_v59 = vpop.f32.mrf.mxu0 }
 0x42c   :  { %v1501_v18 = vmul.f32 %v1485_v33, %v1485_v33  ;;  %v1471_v55 = vsub.f32 %v911_v59, %v2306_v5  ;;  %1087 = vmatmul.mubr.f32.gmra.mxu1 %v1898_v8  ;;  %v1488_v61 = vmul.f32 0.0, %v1472_v53 }
 0x42d   :  { %v1907_v12 = vpop.f32.mrf.mxu0  ;;  %1092 = vmatprep.mubr.f32.mxu1 %v2002_v31 }
 0x42e   :  { %v1516_v35 = vadd.f32 %v1515_v39, %v1501_v18  ;;  %v1487_v58 = vmul.f32 0.0, %v1471_v55  ;;  %v1474_v60 = vsub.f32 %v1907_v12, %v2314_v9  ;;  %v1504_v30 = vmul.f32 %v1488_v61, %v1488_v61  ;;  %v992_v55 = vld [vmem:[%s3148_s6] sm:$0x3] }
 0x42f   :  { %v921_v28 = vpop.f32.mrf.mxu0  ;;  %v1000_v39 = vsub.s32 1, %v2735_v62 }
 0x430   :  { %v1503_v40 = vmul.f32 %v1487_v58, %v1487_v58  ;;  %v1517_v22 = vadd.f32 %v1516_v35, %v1502_v63  ;;  %v1473_v3 = vsub.f32 %v921_v28, %v2318_v11  ;;  %1093 = vmatmul.mubr.f32.gmra.mxu1 %v901_v51  ;;  %v1490_v50 = vmul.f32 0.0, %v1474_v60 }
 0x431   :  { %v1910_v2 = vpop.f32.mrf.mxu0  ;;  %1098 = vmatprep.mubr.f32.mxu1 %v2002_v31 }
 0x432   :  { %v1518_v5 = vadd.f32 %v1517_v22, %v1503_v40  ;;  %v1489_v14 = vmul.f32 0.0, %v1473_v3  ;;  %v1476_v6 = vsub.f32 %v1910_v2, %v2326_v15  ;;  %v1506_v11 = vmul.f32 %v1490_v50, %v1490_v50 }
 0x433   :  { %v931_v45 = vpop.f32.mrf.mxu0 }
 0x434   :  { %v1505_v38 = vmul.f32 %v1489_v14, %v1489_v14  ;;  %v1519_v1 = vadd.f32 %v1518_v5, %v1504_v30  ;;  %v1475_v9 = vsub.f32 %v931_v45, %v2330_v17  ;;  %1099 = vmatmul.mubr.f32.gmra.mxu1 %v1901_v54  ;;  %v1492_v32 = vmul.f32 0.0, %v1476_v6 }
 0x435   :  { %v1913_v43 = vpop.f32.mrf.mxu0  ;;  %1104 = vmatprep.mubr.f32.mxu1 %v2002_v31 }
 0x436   :  { %v1520_v10 = vadd.f32 %v1519_v1, %v1505_v38  ;;  %v1491_v47 = vmul.f32 0.0, %v1475_v9  ;;  %v1478_v16 = vsub.f32 %v1913_v43, %v2338_v21  ;;  %v1508_v42 = vmul.f32 %v1492_v32, %v1492_v32 }
 0x437   :  { %v941_v24 = vpop.f32.mrf.mxu0 }
 0x438   :  { %v1507_v56 = vmul.f32 %v1491_v47, %v1491_v47  ;;  %v1521_v44 = vadd.f32 %v1520_v10, %v1506_v11  ;;  %v1477_v15 = vsub.f32 %v941_v24, %v2342_v23  ;;  %1105 = vmatmul.mubr.f32.gmra.mxu1 %v911_v59  ;;  %v1494_v48 = vmul.f32 0.0, %v1478_v16 }
 0x439   :  { %v1916_v0 = vpop.f32.mrf.mxu0  ;;  %1110 = vmatprep.mubr.f32.mxu1 %v2002_v31 }
 0x43a   :  { %v1522_v17 = vadd.f32 %v1521_v44, %v1507_v56  ;;  %v1493_v36 = vmul.f32 0.0, %v1477_v15  ;;  %v1480_v8 = vsub.f32 %v1916_v0, %v2350_v27  ;;  %v1510_v13 = vmul.f32 %v1494_v48, %v1494_v48 }
 0x43b   :  { %v951_v41 = vpop.f32.mrf.mxu0  ;;  %v996_v56 = vsub.s32 0, %v2735_v62 }
 0x43c   :  { %v1509_v7 = vmul.f32 %v1493_v36, %v1493_v36  ;;  %v1523_v20 = vadd.f32 %v1522_v17, %v1508_v42  ;;  %v1479_v21 = vsub.f32 %v951_v41, %v2354_v29  ;;  %1111 = vmatmul.mubr.f32.gmra.mxu1 %v1904_v4  ;;  %v1496_v54 = vmul.f32 0.0, %v1480_v8 }
 0x43d   :  { %1116 = vmatprep.mubr.f32.mxu1 %v2002_v31 }
 0x43e   :  { %v1524_v23 = vadd.f32 %v1523_v20, %v1509_v7  ;;  %v1495_v49 = vmul.f32 0.0, %v1479_v21  ;;  %v1512_v52 = vmul.f32 %v1496_v54, %v1496_v54 }
 0x440   :  { %v1511_v19 = vmul.f32 %v1495_v49, %v1495_v49  ;;  %v1525_v34 = vadd.f32 %v1524_v23, %v1510_v13  ;;  %1117 = vmatmul.mubr.f32.gmra.mxu1 %v921_v28 }
 0x441   :  { %1122 = vmatprep.mubr.f32.mxu1 %v2002_v31 }
 0x442   :  { %v1526_v51 = vadd.f32 %v1525_v34, %v1511_v19 }
 0x444   :  { %v1527_v27 = vadd.f32 %v1526_v51, %v1512_v52  ;;  %1123 = vmatmul.mubr.f32.gmra.mxu1 %v1907_v12  ;;  %v2921_v12 = vrot.slane %v992_v55, %v1000_v39 }
 0x445   :  { %1128 = vmatprep.mubr.f32.mxu1 %v2002_v31 }
 0x446   :  { %v1528_v26 = vrot.slane %v1527_v27, 4 }
 0x448   :  { %v1529_v29 = vadd.f32 %v1528_v26, %v1527_v27  ;;  %1129 = vmatmul.mubr.f32.gmra.mxu1 %v931_v45 }
 0x449   :  { %1134 = vmatprep.mubr.f32.mxu1 %v2002_v31 }
 0x44a   :  { %v1530_v46 = vrot.slane %v1529_v29, 2 }
 0x44c   :  { %v1531_v4 = vadd.f32 %v1530_v46, %v1529_v29  ;;  %1135 = vmatmul.mubr.f32.gmra.mxu1 %v1910_v2 }
 0x44d   :  { %1140 = vmatprep.mubr.f32.mxu1 %v2002_v31 }
 0x44e   :  { %v1532_v37 = vrot.slane %v1531_v4, 1 }
 0x450   :  { %v1533_v57 = vadd.f32 %v1532_v37, %v1531_v4  ;;  %1141 = vmatmul.mubr.f32.gmra.mxu1 %v941_v24 }
 0x451   :  { %1146 = vmatprep.mubr.f32.mxu1 %v2002_v31 }
 0x452   :  { %1534 = vst [vmem:[%s3147_s9] sm:$0x1] %v1533_v57 }
 0x454   :  { %1147 = vmatmul.mubr.f32.gmra.mxu1 %v1913_v43 }
 0x455   :  { %1152 = vmatprep.mubr.f32.mxu1 %v2002_v31 }
 0x458   :  { %1153 = vmatmul.mubr.f32.gmra.mxu1 %v951_v41  ;;  %v2960_v41 = vrot.slane %v992_v55, %v996_v56 }
 0x459   :  { %1158 = vmatprep.mubr.f32.mxu1 %v2002_v31 }
 0x45c   :  { %1159 = vmatmul.mubr.f32.gmra.mxu1 %v1916_v0 }
 0x4e0   :  { %v2911_v33 = vpop.f32.mrf.mxu1 }
 0x4e1   :  { %v1071_v34 = vadd.f32 %v2911_v33, %v2960_v41 }
 0x4e2   :  { %v1072_v53 = vpop.f32.mrf.mxu1 }
 0x4e3   :  { %v1073_v58 = vadd.f32 %v1072_v53, %v2921_v12  ;;  %v1985_v53 = vld [vmem:[%s3141_s0] sm:$0xff] }
 0x4e4   :  { %v2913_v59 = vpop.f32.mrf.mxu1  ;;  %v1267_v39 = vsub.f32 %v1985_v53, %v1071_v34  ;;  %v1991_v34 = vld [vmem:[%s3141_s0 + $0x30] sm:$0xff] }
 0x4e5   :  { %1921 = vtanh.f32 %v1073_v58  ;;  %v1077_v29 = vadd.f32 %v2913_v59, %v2960_v41  ;;  %v1986_v58 = vld [vmem:[%s3141_s0 + $0x8] sm:$0xff] }
 0x4e6   :  { %v1078_v18 = vpop.f32.mrf.mxu1 }
 0x4e7   :  { %v1079_v28 = vadd.f32 %v1078_v18, %v2921_v12 }
 0x4e8   :  { %v2919_v61 = vpop.f32.mrf.mxu1 }
 0x4e9   :  { %1923 = vtanh.f32 %v1079_v28  ;;  %v1083_v46 = vadd.f32 %v2919_v61, %v2960_v41  ;;  %v1987_v28 = vld [vmem:[%s3141_s0 + $0x10] sm:$0xff] }
 0x4ea   :  { %v1084_v63 = vpop.f32.mrf.mxu1 }
 0x4eb   :  { %v1085_v22 = vadd.f32 %v1084_v63, %v2921_v12 }
 0x4ec   :  { %v2923_v35 = vpop.f32.mrf.mxu1 }
 0x4ed   :  { %1925 = vtanh.f32 %v1085_v22  ;;  %v1089_v18 = vadd.f32 %v2923_v35, %v2960_v41  ;;  %v1269_v35 = vsub.f32 %v1987_v28, %v1083_v46 }
 0x4ee   :  { %v1090_v60 = vpop.f32.mrf.mxu1 }
 0x4ef   :  { %v1091_v30 = vadd.f32 %v1090_v60, %v2921_v12  ;;  %v1268_v60 = vsub.f32 %v1986_v58, %v1077_v29 }
 0x4f0   :  { %v2927_v40 = vpop.f32.mrf.mxu1 }
 0x4f1   :  { %1927 = vtanh.f32 %v1091_v30  ;;  %v1095_v22 = vadd.f32 %v2927_v40, %v2960_v41  ;;  %v1284_v56 = vmul.f32 0.5, %v1268_v60 }
 0x4f2   :  { %v1096_v3 = vpop.f32.mrf.mxu1  ;;  %v2940_v9 = vpop.eup %1921 }
 0x4f3   :  { %v1097_v5 = vadd.f32 %v1096_v3, %v2921_v12  ;;  %v1315_v47 = vmul.f32 -2.0, %v2940_v9  ;;  %v1300_v29 = vmul.f32 %v1284_v56, %v1268_v60 }
 0x4f4   :  { %v2931_v2 = vpop.f32.mrf.mxu1 }
 0x4f5   :  { %1929 = vtanh.f32 %v1097_v5  ;;  %v1331_v17 = vmul.f32 1.442695, %v1315_v47  ;;  %v1101_v3 = vadd.f32 %v2931_v2, %v2960_v41 }
 0x4f6   :  { %v1102_v50 = vpop.f32.mrf.mxu1  ;;  %v2942_v43 = vpop.eup %1923 }
 0x4f7   :  { %v1103_v14 = vadd.f32 %v1102_v50, %v2921_v12  ;;  %v1316_v44 = vmul.f32 -2.0, %v2942_v43 }
 0x4f8   :  { %v2935_v6 = vpop.f32.mrf.mxu1 }
 0x4f9   :  { %1931 = vtanh.f32 %v1103_v14  ;;  %v1333_v7 = vmul.f32 1.442695, %v1316_v44  ;;  %v1283_v14 = vmul.f32 0.5, %v1267_v39  ;;  %v1107_v40 = vadd.f32 %v2935_v6, %v2960_v41  ;;  %v1990_v6 = vld [vmem:[%s3141_s0 + $0x28] sm:$0xff] }
 0x4fa   :  { %v1108_v45 = vpop.f32.mrf.mxu1  ;;  %v2948_v16 = vpop.eup %1925 }
 0x4fb   :  { %v1109_v38 = vadd.f32 %v1108_v45, %v2921_v12  ;;  %v1317_v48 = vmul.f32 -2.0, %v2948_v16  ;;  %v1988_v45 = vld [vmem:[%s3141_s0 + $0x18] sm:$0xff]  ;;  %v1299_v25 = vmul.f32 %v1283_v14, %v1267_v39 }
 0x4fc   :  { %v2938_v1 = vpop.f32.mrf.mxu1 }
 0x4fd   :  { %1933 = vtanh.f32 %v1109_v38  ;;  %v1335_v23 = vmul.f32 1.442695, %v1317_v48  ;;  %v1270_v38 = vsub.f32 %v1988_v45, %v1089_v18  ;;  %v1113_v46 = vadd.f32 %v2938_v1, %v2960_v41 }
 0x4fe   :  { %v1114_v32 = vpop.f32.mrf.mxu1  ;;  %v2955_v0 = vpop.eup %1927 }
 0x4ff   :  { %v1115_v11 = vadd.f32 %v1114_v32, %v2921_v12  ;;  %v1318_v62 = vmul.f32 -2.0, %v2955_v0 }
 0x500   :  { %v2945_v10 = vpop.f32.mrf.mxu1 }
 0x501   :  { %1935 = vtanh.f32 %v1115_v11  ;;  %v1337_v52 = vmul.f32 1.442695, %v1318_v62 }
 0x502   :  { %v1120_v24 = vpop.f32.mrf.mxu1  ;;  %v2958_v36 = vpop.eup %1929 }
 0x503   :  { %v1121_v15 = vadd.f32 %v1120_v24, %v2921_v12  ;;  %v1319_v54 = vmul.f32 -2.0, %v2958_v36  ;;  %v3018_v24 = vsel %vm1264_vm0, 1.0, %v2002_v31 }
 0x504   :  { %v2953_v42 = vpop.f32.mrf.mxu1  ;;  %v3029_v31 = vmul.f32 0.0, %v3018_v24 }
 0x505   :  { %1937 = vtanh.f32 %v1121_v15  ;;  %v1339_v4 = vmul.f32 1.442695, %v1319_v54  ;;  %v1285_v15 = vmul.f32 0.5, %v1269_v35  ;;  %v1125_v45 = vadd.f32 %v2953_v42, %v2960_v41 }
 0x506   :  { %v1126_v8 = vpop.f32.mrf.mxu1  ;;  %v2966_v13 = vpop.eup %1931  ;;  %1939 = vpow2.f32 %v1331_v17  ;;  %v1989_v17 = vld [vmem:[%s3141_s0 + $0x20] sm:$0xff] }
 0x507   :  { %v1127_v20 = vadd.f32 %v1126_v8, %v2921_v12  ;;  %v1320_v51 = vmul.f32 -2.0, %v2966_v13  ;;  %v1271_v48 = vsub.f32 %v1989_v17, %v1095_v22  ;;  %v1272_v8 = vsub.f32 %v1990_v6, %v1101_v3 }
 0x508   :  { %v2964_v21 = vpop.f32.mrf.mxu1 }
 0x509   :  { %1941 = vtanh.f32 %v1127_v20  ;;  %v1341_v59 = vmul.f32 1.442695, %v1320_v51  ;;  %v1287_v53 = vmul.f32 0.5, %v1271_v48  ;;  %v1288_v39 = vmul.f32 0.5, %v1272_v8 }
 0x50a   :  { %v1132_v49 = vpop.f32.mrf.mxu1  ;;  %v2969_v19 = vpop.eup %1933  ;;  %1943 = vpow2.f32 %v1333_v7 }
 0x50b   :  { %v1133_v27 = vadd.f32 %v1132_v49, %v2921_v12  ;;  %1945 = vpow2.f32 %v1335_v23  ;;  %v1321_v37 = vmul.f32 -2.0, %v2969_v19  ;;  %v1286_v49 = vmul.f32 0.5, %v1270_v38 }
 0x50c   :  { %v2975_v26 = vpop.f32.mrf.mxu1  ;;  %v1304_v6 = vmul.f32 %v1288_v39, %v1272_v8 }
 0x50d   :  { %1947 = vtanh.f32 %v1133_v27  ;;  %v1343_v30 = vmul.f32 1.442695, %v1321_v37  ;;  %v1302_v28 = vmul.f32 %v1286_v49, %v1270_v38 }
 0x50e   :  { %v1138_v57 = vpop.f32.mrf.mxu1  ;;  %v2982_v33 = vpop.eup %1935  ;;  %1949 = vpow2.f32 %v1337_v52  ;;  %v1273_v52 = vsub.f32 %v1991_v34, %v1107_v40  ;;  %v1303_v40 = vmul.f32 %v1287_v53, %v1271_v48 }
 0x50f   :  { %v1322_v55 = vmul.f32 -2.0, %v2982_v33  ;;  %v1139_v61 = vadd.f32 %v1138_v57, %v2921_v12  ;;  %1951 = vpow2.f32 %v1339_v4  ;;  %v1119_v4 = vadd.f32 %v2945_v10, %v2960_v41 }
 0x510   :  { %v2991_v63 = vpop.f32.mrf.mxu1  ;;  %v1301_v57 = vmul.f32 %v1285_v15, %v1269_v35  ;;  %v1289_v22 = vmul.f32 0.5, %v1273_v52  ;;  %v1992_v35 = vld [vmem:[%s3141_s0 + $0x38] sm:$0xff] }
 0x511   :  { %1953 = vtanh.f32 %v1139_v61  ;;  %v1345_v11 = vmul.f32 1.442695, %v1322_v55 }
 0x512   :  { %v1144_v5 = vpop.f32.mrf.mxu1  ;;  %v3004_v50 = vpop.eup %1937  ;;  %1955 = vpow2.f32 %v1341_v59 }
 0x513   :  { %v1145_v32 = vadd.f32 %v1144_v5, %v2921_v12  ;;  %v1323_v2 = vmul.f32 -2.0, %v3004_v50  ;;  %v1940_v44 = vpop.eup %1939  ;;  %v1993_v5 = vld [vmem:[%s3141_s0 + $0x40] sm:$0xff] }
 0x514   :  { %v3013_v47 = vpop.f32.mrf.mxu1  ;;  %v1363_v61 = vmul.f32 %v1940_v44, %v1299_v25  ;;  %v1275_v14 = vsub.f32 %v1993_v5, %v1119_v4 }
 0x515   :  { %1957 = vtanh.f32 %v1145_v32  ;;  %v1347_v20 = vmul.f32 1.442695, %v1323_v2 }
 0x516   :  { %1959 = vpow2.f32 %v1343_v30  ;;  %v1150_v7 = vpop.f32.mrf.mxu1  ;;  %v3026_v62 = vpop.eup %1941  ;;  %v1274_v30 = vsub.f32 %v1992_v35, %v1113_v46  ;;  %v1379_v15 = vadd.f32 0.9189385, %v1363_v61  ;;  %v1291_v48 = vmul.f32 0.5, %v1275_v14 }
 0x517   :  { %v1151_v23 = vadd.f32 %v1150_v7, %v2921_v12  ;;  %v1944_v54 = vpop.eup %1943  ;;  %1961 = vpow2.f32 %v1345_v11  ;;  %v1324_v51 = vmul.f32 -2.0, %v3026_v62  ;;  %v1131_v11 = vadd.f32 %v2964_v21, %v2960_v41  ;;  %v1994_v21 = vld [vmem:[%s3141_s0 + $0x48] sm:$0xff] }
 0x518   :  { %v3036_v27 = vpop.f32.mrf.mxu1  ;;  %v1946_v37 = vpop.eup %1945  ;;  %v1364_v58 = vmul.f32 %v1944_v54, %v1300_v29  ;;  %v1290_v54 = vmul.f32 0.5, %v1274_v30  ;;  %v1276_v49 = vsub.f32 %v1994_v21, %v1125_v45  ;;  %v1395_v4 = vadd.f32 %v2940_v9, %v1379_v15 }
 0x519   :  { %1963 = vtanh.f32 %v1151_v23  ;;  %v1349_v18 = vmul.f32 1.442695, %v1324_v51  ;;  %v1365_v32 = vmul.f32 %v1946_v37, %v1301_v57  ;;  %v1137_v57 = vadd.f32 %v2975_v26, %v2960_v41 }
 0x51a   :  { %v1156_v59 = vpop.f32.mrf.mxu1  ;;  %v3042_v55 = vpop.eup %1947  ;;  %1965 = vpow2.f32 %v1347_v20  ;;  %v1380_v17 = vadd.f32 0.9189385, %v1364_v58  ;;  %v1305_v20 = vmul.f32 %v1289_v22, %v1273_v52  ;;  %v1306_v58 = vmul.f32 %v1290_v54, %v1274_v30 }
 0x51b   :  { %v1157_v60 = vadd.f32 %v1156_v59, %v2921_v12  ;;  %1967 = vpow2.f32 %v1349_v18  ;;  %v1325_v1 = vmul.f32 -2.0, %v3042_v55  ;;  %v1950_v3 = vpop.eup %1949  ;;  %v1381_v51 = vadd.f32 0.9189385, %v1365_v32 }
 0x51c   :  { %v3046_v10 = vpop.f32.mrf.mxu1  ;;  %v1952_v38 = vpop.eup %1951  ;;  %v1366_v25 = vmul.f32 %v1950_v3, %v1302_v28  ;;  %v1396_v37 = vadd.f32 %v2942_v43, %v1380_v17  ;;  %v1143_v59 = vadd.f32 %v2991_v63, %v2960_v41  ;;  %v1292_v28 = vmul.f32 0.5, %v1276_v49 }
 0x51d   :  { %1969 = vtanh.f32 %v1157_v60  ;;  %v1351_v2 = vmul.f32 1.442695, %v1325_v1  ;;  %v1367_v8 = vmul.f32 %v1952_v38, %v1303_v40  ;;  %v1307_v60 = vmul.f32 %v1291_v48, %v1275_v14  ;;  %v1996_v38 = vld [vmem:[%s3141_s0 + $0x58] sm:$0xff] }
 0x51e   :  { %v1162_v56 = vpop.f32.mrf.mxu1  ;;  %v3058_v44 = vpop.eup %1953  ;;  %v1382_v39 = vadd.f32 0.9189385, %v1366_v25  ;;  %v1397_v9 = vadd.f32 %v2948_v16, %v1381_v51  ;;  %v1427_v35 = vmul.f32 %v3018_v24, %v1395_v4  ;;  %v1428_v5 = vmul.f32 %v3018_v24, %v1396_v37  ;;  %v1997_v16 = vld [vmem:[%s3141_s0 + $0x60] sm:$0xff] }
 0x51f   :  { %v1163_v7 = vadd.f32 %v1162_v56, %v2921_v12  ;;  %1971 = vpow2.f32 %v1351_v2  ;;  %v1326_v42 = vmul.f32 -2.0, %v3058_v44  ;;  %v1956_v23 = vpop.eup %1955  ;;  %v1995_v12 = vld [vmem:[%s3141_s0 + $0x50] sm:$0xff]  ;;  %v1383_v43 = vadd.f32 0.9189385, %v1367_v8 }
 0x520   :  { %v1277_v52 = vsub.f32 %v1995_v12, %v1131_v11  ;;  %v1368_v18 = vmul.f32 %v1956_v23, %v1304_v6  ;;  %v1398_v30 = vadd.f32 %v2955_v0, %v1382_v39  ;;  %v1278_v32 = vsub.f32 %v1996_v38, %v1137_v57 }
 0x521   :  { %1973 = vtanh.f32 %v1163_v7  ;;  %v1353_v29 = vmul.f32 1.442695, %v1326_v42  ;;  %v1279_v40 = vsub.f32 %v1997_v16, %v1143_v59  ;;  %v1308_v56 = vmul.f32 %v1292_v28, %v1276_v49 }
 0x522   :  { %v3065_v34 = vpop.eup %1957  ;;  %v1293_v26 = vmul.f32 0.5, %v1277_v52  ;;  %v1384_v14 = vadd.f32 0.9189385, %v1368_v18  ;;  %v1149_v15 = vadd.f32 %v3013_v47, %v2960_v41  ;;  %v1429_v0 = vmul.f32 %v3018_v24, %v1397_v9 }
 0x523   :  { %v1960_v46 = vpop.eup %1959  ;;  %v1327_v53 = vmul.f32 -2.0, %v3065_v34  ;;  %1975 = vpow2.f32 %v1353_v29  ;;  %v1399_v7 = vadd.f32 %v2958_v36, %v1383_v43  ;;  %v1443_v42 = vadd.f32 %v1428_v5, %v1427_v35  ;;  %v1998_v36 = vld [vmem:[%s3141_s0 + $0x68] sm:$0xff] }
 0x524   :  { %v1962_v61 = vpop.eup %1961  ;;  %v1369_v3 = vmul.f32 %v1960_v46, %v1305_v20  ;;  %v1309_v20 = vmul.f32 %v1293_v26, %v1277_v52  ;;  %v1430_v48 = vmul.f32 %v3018_v24, %v1398_v30  ;;  %v1400_v21 = vadd.f32 %v2966_v13, %v1384_v14 }
 0x525   :  { %v1355_v22 = vmul.f32 1.442695, %v1327_v53  ;;  %v1370_v2 = vmul.f32 %v1962_v61, %v1306_v58  ;;  %v1294_v49 = vmul.f32 0.5, %v1278_v32  ;;  %v1295_v47 = vmul.f32 0.5, %v1279_v40 }
 0x526   :  { %v3077_v1 = vpop.eup %1963  ;;  %v1385_v25 = vadd.f32 0.9189385, %v1369_v3  ;;  %v1280_v29 = vsub.f32 %v1998_v36, %v1149_v15  ;;  %v1444_v4 = vadd.f32 %v1443_v42, %v1429_v0  ;;  %v1431_v37 = vmul.f32 %v3029_v31, %v1399_v7 }
 0x527   :  { %1977 = vpow2.f32 %v1355_v22  ;;  %v1328_v45 = vmul.f32 -2.0, %v3077_v1  ;;  %v1966_v63 = vpop.eup %1965  ;;  %v1386_v8 = vadd.f32 0.9189385, %v1370_v2  ;;  %v1155_v13 = vadd.f32 %v3036_v27, %v2960_v41  ;;  %v1999_v27 = vld [vmem:[%s3141_s0 + $0x70] sm:$0xff] }
 0x528   :  { %v1968_v11 = vpop.eup %1967  ;;  %v1371_v23 = vmul.f32 %v1966_v63, %v1307_v60  ;;  %v1401_v24 = vadd.f32 %v2969_v19, %v1385_v25  ;;  %v1445_v18 = vadd.f32 %v1444_v4, %v1430_v48  ;;  %v1432_v59 = vmul.f32 %v3029_v31, %v1400_v21 }
 0x529   :  { %v1357_v17 = vmul.f32 1.442695, %v1328_v45  ;;  %v1372_v12 = vmul.f32 %v1968_v11, %v1308_v56  ;;  %v1310_v61 = vmul.f32 %v1294_v49, %v1278_v32  ;;  %v1311_v58 = vmul.f32 %v1295_v47, %v1279_v40 }
 0x52a   :  { %v3092_v6 = vpop.eup %1969  ;;  %v1387_v57 = vadd.f32 0.9189385, %v1371_v23  ;;  %v1402_v28 = vadd.f32 %v2982_v33, %v1386_v8  ;;  %v1296_v9 = vmul.f32 0.5, %v1280_v29  ;;  %v1446_v19 = vadd.f32 %v1445_v18, %v1431_v37 }
 0x52b   :  { %1979 = vpow2.f32 %v1357_v17  ;;  %v1329_v54 = vmul.f32 -2.0, %v3092_v6  ;;  %v1388_v22 = vadd.f32 0.9189385, %v1372_v12  ;;  %v1281_v26 = vsub.f32 %v1999_v27, %v1155_v13 }
 0x52c   :  { %v1972_v51 = vpop.eup %1971  ;;  %v1161_v35 = vadd.f32 %v3046_v10, %v2960_v41  ;;  %v1433_v5 = vmul.f32 %v3029_v31, %v1401_v24  ;;  %v1403_v45 = vadd.f32 %v3004_v50, %v1387_v57  ;;  %v1447_v30 = vadd.f32 %v1446_v19, %v1432_v59  ;;  %v2000_v41 = vld [vmem:[%s3141_s0 + $0x78] sm:$0xff] }
 0x52d   :  { %v1359_v52 = vmul.f32 1.442695, %v1329_v54  ;;  %v1373_v53 = vmul.f32 %v1972_v51, %v1309_v20  ;;  %v1434_v14 = vmul.f32 %v3029_v31, %v1402_v28  ;;  %v1404_v38 = vadd.f32 %v3026_v62, %v1388_v22 }
 0x52e   :  { %v3102_v46 = vpop.eup %1973  ;;  %v1312_v40 = vmul.f32 %v1296_v9, %v1280_v29  ;;  %v1297_v11 = vmul.f32 0.5, %v1281_v26  ;;  %v1282_v10 = vsub.f32 %v2000_v41, %v1161_v35  ;;  %v1448_v2 = vadd.f32 %v1447_v30, %v1433_v5 }
 0x52f   :  { %1981 = vpow2.f32 %v1359_v52  ;;  %v1330_v39 = vmul.f32 -2.0, %v3102_v46  ;;  %v1389_v63 = vadd.f32 0.9189385, %v1373_v53  ;;  %v1435_v50 = vmul.f32 %v3029_v31, %v1403_v45 }
 0x530   :  { %v1976_v60 = vpop.eup %1975  ;;  %v1449_v0 = vadd.f32 %v1448_v2, %v1434_v14  ;;  %v1436_v7 = vmul.f32 %v3029_v31, %v1404_v38  ;;  %v1313_v20 = vmul.f32 %v1297_v11, %v1281_v26  ;;  %v1298_v42 = vmul.f32 0.5, %v1282_v10 }
 0x531   :  { %v1361_v43 = vmul.f32 1.442695, %v1330_v39  ;;  %v1374_v3 = vmul.f32 %v1976_v60, %v1310_v61  ;;  %v1405_v56 = vadd.f32 %v3042_v55, %v1389_v63 }
 0x532   :  { %v1450_v23 = vadd.f32 %v1449_v0, %v1435_v50  ;;  %v1314_v29 = vmul.f32 %v1298_v42, %v1282_v10 }
 0x533   :  { %1983 = vpow2.f32 %v1361_v43  ;;  %v1390_v32 = vadd.f32 0.9189385, %v1374_v3  ;;  %v1437_v54 = vmul.f32 %v3029_v31, %v1405_v56 }
 0x534   :  { %v1978_v33 = vpop.eup %1977  ;;  %v1451_v47 = vadd.f32 %v1450_v23, %v1436_v7 }
 0x535   :  { %v1375_v16 = vmul.f32 %v1978_v33, %v1311_v58  ;;  %v1406_v62 = vadd.f32 %v3058_v44, %v1390_v32 }
 0x536   :  { %v1452_v12 = vadd.f32 %v1451_v47, %v1437_v54 }
 0x537   :  { %v1391_v15 = vadd.f32 0.9189385, %v1375_v16  ;;  %v1438_v55 = vmul.f32 %v3029_v31, %v1406_v62 }
 0x538   :  { %v1980_v17 = vpop.eup %1979 }
 0x539   :  { %v1376_v25 = vmul.f32 %v1980_v17, %v1312_v40  ;;  %v1407_v48 = vadd.f32 %v3065_v34, %v1391_v15  ;;  %v1453_v4 = vadd.f32 %v1452_v12, %v1438_v55 }
 0x53b   :  { %v1392_v21 = vadd.f32 0.9189385, %v1376_v25  ;;  %v1439_v36 = vmul.f32 %v3029_v31, %v1407_v48 }
 0x53c   :  { %v1982_v49 = vpop.eup %1981 }
 0x53d   :  { %v1408_v51 = vadd.f32 %v3077_v1, %v1392_v21  ;;  %v1377_v8 = vmul.f32 %v1982_v49, %v1313_v20  ;;  %v1454_v13 = vadd.f32 %v1453_v4, %v1439_v36 }
 0x53f   :  { %v1393_v44 = vadd.f32 0.9189385, %v1377_v8  ;;  %v1440_v37 = vmul.f32 %v3029_v31, %v1408_v51 }
 0x540   :  { %v1984_v52 = vpop.eup %1983 }
 0x541   :  { %v1409_v24 = vadd.f32 %v3092_v6, %v1393_v44  ;;  %v1378_v34 = vmul.f32 %v1984_v52, %v1314_v29  ;;  %v1455_v39 = vadd.f32 %v1454_v13, %v1440_v37 }
 0x543   :  { %v1441_v57 = vmul.f32 %v3029_v31, %v1409_v24  ;;  %v1394_v53 = vadd.f32 0.9189385, %v1378_v34 }
 0x545   :  { %v1410_v1 = vadd.f32 %v3102_v46, %v1394_v53  ;;  %v1456_v18 = vadd.f32 %v1455_v39, %v1441_v57 }
 0x547   :  { %v1442_v59 = vmul.f32 %v3029_v31, %v1410_v1 }
 0x549   :  { %v1457_v61 = vadd.f32 %v1456_v18, %v1442_v59 }
 0x54b   :  { %v1458_v58 = vrot.slane %v1457_v61, 4 }
 0x54d   :  { %v1459_v60 = vadd.f32 %v1458_v58, %v1457_v61 }
 0x54f   :  { %v1460_v28 = vrot.slane %v1459_v60, 2 }
 0x551   :  { %v1461_v22 = vadd.f32 %v1460_v28, %v1459_v60 }
 0x553   :  { %v1462_v9 = vrot.slane %v1461_v22, 1 }
 0x555   :  { %v1463_v43 = vadd.f32 %v1462_v9, %v1461_v22 }
 0x557   :  { %1464 = vst [vmem:[%s3149_s8] sm:$0x1] %v1463_v43 }

</bundles_post_ra>
